<compile_context>
chip_gen: v6e
topology: v6e:2x2x1
jax: 0.10.0
libtpu: 0.0.40
codegen_flags: <defaults>
</compile_context>

<pallas_src>
import numpy as np
import jax
import jax.numpy as jnp
from jax.experimental import pallas as pl
from jax.experimental.pallas import tpu as pltpu

# ----------------------------- configuration -----------------------------
ENCODED_DIM = 32      # encoded_space_dim
N_CHANNELS = 4        # global `n_channels` in the original file
BATCH = 2
BN_EPS = 1e-5


def _conv_output_size(size):
    for _ in range(3):
        size = (size + 2 * 1 - 4) // 2 + 1
    return size


CONV_OUT = _conv_output_size(128)          # = 16
L1, L2, L3 = 32, 64, 128                   # lengths after each ConvTranspose1d


def _round_up(n, m):
    return ((n + m - 1) // m) * m


# ----------------------------- Pallas kernel -----------------------------
def decoder_kernel(x_ref,
                   w1_ref, b1_ref,          # Linear(E,128)
                   w2_ref, b2_ref,          # Linear(128, 32*16)
                   m1_ref, c1_ref,          # convT1 dense (BN1 + bias folded)
                   m2_ref, c2_ref,          # convT2 dense (BN2 + bias folded)
                   m3_ref, c3_ref,          # convT3 dense + bias
                   o_ref):
    f32 = jnp.float32
    bf16 = jnp.bfloat16

    # decoder_lin: Linear(E,128) + ReLU, Linear(128, 32*16) + ReLU
    h = jnp.dot(x_ref[...], w1_ref[...], preferred_element_type=f32) + b1_ref[...]
    h = jnp.maximum(h, 0.0)
    h = jnp.dot(h.astype(bf16), w2_ref[...], preferred_element_type=f32) + b2_ref[...]
    h = jnp.maximum(h, 0.0)                                          # (TB, 32*16)

    # ConvTranspose1d(32->16) + BatchNorm1d(16) + ReLU  (BN folded into m1/c1)
    h = jnp.dot(h.astype(bf16), m1_ref[...], preferred_element_type=f32) + c1_ref[...]
    h = jnp.maximum(h, 0.0)                                          # (TB, 16*32)

    # ConvTranspose1d(16->8) + BatchNorm1d(8) + ReLU  (BN folded into m2/c2)
    h = jnp.dot(h.astype(bf16), m2_ref[...], preferred_element_type=f32) + c2_ref[...]
    h = jnp.maximum(h, 0.0)                                          # (TB, 8*64)

    # ConvTranspose1d(8->n_channels)
    h = jnp.dot(h.astype(bf16), m3_ref[...], preferred_element_type=f32) + c3_ref[...]  # (TB, C*128)

    # F.interpolate(size=128, linear, align_corners=True) is an exact identity here.
    o_ref[...] = jax.nn.sigmoid(h)


# ----------------------------- glue: param folding -----------------------------
def convT_dense(W, L_in, stride=2, padding=1):
    """Fold a ConvTranspose1d weight (C_in, C_out, K) into a dense matrix
    mapping the flattened (C_in*L_in) input to the flattened (C_out*L_out) output."""
    C_in, C_out, K = W.shape
    L_out = (L_in - 1) * stride - 2 * padding + K
    M = np.zeros((C_in * L_in, C_out * L_out), np.float32)
    for ci in range(C_in):
        for l in range(L_in):
            for co in range(C_out):
                for k in range(K):
                    t = l * stride - padding + k
                    if 0 <= t < L_out:
                        M[ci * L_in + l, co * L_out + t] += W[ci, co, k]
    return M, L_out


def bias_flat(b, L_out):
    # (C,) -> (1, C*L_out): per-channel bias broadcast over positions
    return np.repeat(np.asarray(b, np.float32), L_out)[None, :]


def bn_scale_shift(gamma, beta, mean, var, eps=BN_EPS):
    scale = np.asarray(gamma, np.float32) / np.sqrt(np.asarray(var, np.float32) + eps)
    shift = np.asarray(beta, np.float32) - np.asarray(mean, np.float32) * scale
    return scale, shift


def make_params(key):
    ks = jax.random.split(key, 18)

    def nrm(k, shape, scale=0.1):
        return np.asarray(jax.random.normal(k, shape, jnp.float32) * scale)

    p = {}
    # decoder_lin
    p["w1"] = nrm(ks[0], (ENCODED_DIM, 128))
    p["b1"] = nrm(ks[1], (1, 128))
    p["w2"] = nrm(ks[2], (128, 32 * CONV_OUT))
    p["b2"] = nrm(ks[3], (1, 32 * CONV_OUT))

    # ConvTranspose1d weights in PyTorch layout (C_in, C_out, K)
    wT1 = nrm(ks[4], (32, 16, 4));        bT1 = nrm(ks[5], (16,))
    wT2 = nrm(ks[6], (16, 8, 4));         bT2 = nrm(ks[7], (8,))
    wT3 = nrm(ks[8], (8, N_CHANNELS, 4)); bT3 = nrm(ks[9], (N_CHANNELS,))

    m1, l1 = convT_dense(wT1, CONV_OUT)   # 16 -> 32
    m2, l2 = convT_dense(wT2, l1)         # 32 -> 64
    m3, l3 = convT_dense(wT3, l2)         # 64 -> 128
    assert (l1, l2, l3) == (L1, L2, L3)

    # BatchNorm1d (eval-mode semantics), independent keys for all stats
    g1, be1 = nrm(ks[10], (16,), 1.0) + 1.0, nrm(ks[11], (16,))
    g2, be2 = nrm(ks[12], (8,), 1.0) + 1.0, nrm(ks[13], (8,))
    rm1, rv1 = nrm(ks[14], (16,)), np.abs(nrm(ks[15], (16,))) + 1.0
    rm2, rv2 = nrm(ks[16], (8,)),  np.abs(nrm(ks[17], (8,))) + 1.0

    # Fold BN + conv bias into the dense conv matrices (in f32, before any cast):
    #   y = (x @ M + bias) * s + t   ==>   y = x @ (M * s_col) + (bias*s + t)
    s1, t1 = bn_scale_shift(g1, be1, rm1, rv1)
    s2, t2 = bn_scale_shift(g2, be2, rm2, rv2)
    s1f, t1f = np.repeat(s1, L1)[None, :], np.repeat(t1, L1)[None, :]
    s2f, t2f = np.repeat(s2, L2)[None, :], np.repeat(t2, L2)[None, :]

    p["m1"] = m1 * s1f
    p["c1"] = bias_flat(bT1, L1) * s1f + t1f
    p["m2"] = m2 * s2f
    p["c2"] = bias_flat(bT2, L2) * s2f + t2f
    p["m3"] = m3
    p["c3"] = bias_flat(bT3, L3)

    # bf16 for the large matmul operands (halves weight DMA); everything
    # elementwise (biases, folded shifts) stays f32.
    out = {}
    for k, v in p.items():
        if k in ("w2", "m1", "m2", "m3"):
            out[k] = jnp.asarray(v, jnp.bfloat16)
        else:
            out[k] = jnp.asarray(v, jnp.float32)
    return out


# ----------------------------- wrapper -----------------------------
def decoder_forward(x, p, max_tile=256):
    B, E = x.shape
    # Batch tile: at least 8 rows (sublane fill), up to 256 (full MXU on v6e/v7x).
    TB = min(max_tile, max(8, _round_up(B, 8)))
    B_pad = _round_up(B, TB)
    if B_pad != B:
        x = jnp.pad(x, ((0, B_pad - B), (0, 0)))

    def resident(arr):
        # Weights/biases: full-array block, same block every grid step ->
        # loaded into VMEM once and kept resident.
        return pl.BlockSpec(arr.shape, lambda i: (0, 0))

    out_flat = pl.pallas_call(
        decoder_kernel,
        out_shape=jax.ShapeDtypeStruct((B_pad, N_CHANNELS * L3), jnp.float32),
        grid=(B_pad // TB,),
        in_specs=[
            pl.BlockSpec((TB, E), lambda i: (i, 0)),       # x: tiled over batch
            resident(p["w1"]), resident(p["b1"]),
            resident(p["w2"]), resident(p["b2"]),
            resident(p["m1"]), resident(p["c1"]),
            resident(p["m2"]), resident(p["c2"]),
            resident(p["m3"]), resident(p["c3"]),
        ],
        out_specs=pl.BlockSpec((TB, N_CHANNELS * L3), lambda i: (i, 0)),
        compiler_params=pltpu.CompilerParams(
            dimension_semantics=("parallel",)),            # megacore sharding on v7x
    )(x,
      p["w1"], p["b1"], p["w2"], p["b2"],
      p["m1"], p["c1"], p["m2"], p["c2"], p["m3"], p["c3"])

    # NCL output matching the PyTorch module: (B, n_channels, 128)
    return out_flat[:B].reshape(B, N_CHANNELS, L3)


# ----------------------------- reference (pure JAX, f32) -----------------------------
def decoder_reference(x, p):
    f32 = jnp.float32
    h = x @ p["w1"].astype(f32) + p["b1"]
    h = jnp.maximum(h, 0.0)
    h = h @ p["w2"].astype(f32) + p["b2"]
    h = jnp.maximum(h, 0.0)
    h = h @ p["m1"].astype(f32) + p["c1"]
    h = jnp.maximum(h, 0.0)
    h = h @ p["m2"].astype(f32) + p["c2"]
    h = jnp.maximum(h, 0.0)
    h = h @ p["m3"].astype(f32) + p["c3"]
    return jax.nn.sigmoid(h).reshape(x.shape[0], N_CHANNELS, L3)


if __name__ == "__main__":
    key = jax.random.PRNGKey(0)
    kx, kp = jax.random.split(key)
    x = jax.random.normal(kx, (BATCH, ENCODED_DIM), jnp.float32)
    params = make_params(kp)

    out = decoder_forward(x, params)
    out = jax.block_until_ready(out)

    assert out.shape == (BATCH, N_CHANNELS, 128)
    assert bool(jnp.all(jnp.isfinite(out)))
    assert bool(jnp.all((out >= 0.0) & (out <= 1.0)))      # sigmoid range

    ref = decoder_reference(x, params)
    max_err = float(jnp.max(jnp.abs(out - ref)))
    assert max_err < 5e-2, f"max abs diff vs reference too large: {max_err}"

    print("KERNEL_OK")
</pallas_src>

<mosaic_0001>
module attributes {stable_mosaic.version = 11 : i64} {
  func.func @decoder_kernel(%arg0: i32, %arg1: memref<8x32xf32, #tpu.memory_space<vmem>>, %arg2: memref<32x128xf32, #tpu.memory_space<vmem>>, %arg3: memref<1x128xf32, #tpu.memory_space<vmem>>, %arg4: memref<128x512xbf16, #tpu.memory_space<vmem>>, %arg5: memref<1x512xf32, #tpu.memory_space<vmem>>, %arg6: memref<512x512xbf16, #tpu.memory_space<vmem>>, %arg7: memref<1x512xf32, #tpu.memory_space<vmem>>, %arg8: memref<512x512xbf16, #tpu.memory_space<vmem>>, %arg9: memref<1x512xf32, #tpu.memory_space<vmem>>, %arg10: memref<512x512xbf16, #tpu.memory_space<vmem>>, %arg11: memref<1x512xf32, #tpu.memory_space<vmem>>, %arg12: memref<8x512xf32, #tpu.memory_space<vmem>>) attributes {dimension_semantics = [#tpu.dimension_semantics<parallel>], iteration_bounds = array<i64: 1>, scalar_prefetch = 0 : i64, scratch_operands = 0 : i64, tpu.core_type = #tpu.core_type<tc>, window_params = [{transform_indices = @transform_0, window_bounds = array<i64: 8, 32>}, {pipeline_mode = #tpu.pipeline_mode<synchronous>, transform_indices = @transform_1, window_bounds = array<i64: 32, 128>}, {pipeline_mode = #tpu.pipeline_mode<synchronous>, transform_indices = @transform_2, window_bounds = array<i64: 1, 128>}, {pipeline_mode = #tpu.pipeline_mode<synchronous>, transform_indices = @transform_3, window_bounds = array<i64: 128, 512>}, {pipeline_mode = #tpu.pipeline_mode<synchronous>, transform_indices = @transform_4, window_bounds = array<i64: 1, 512>}, {pipeline_mode = #tpu.pipeline_mode<synchronous>, transform_indices = @transform_5, window_bounds = array<i64: 512, 512>}, {pipeline_mode = #tpu.pipeline_mode<synchronous>, transform_indices = @transform_6, window_bounds = array<i64: 1, 512>}, {pipeline_mode = #tpu.pipeline_mode<synchronous>, transform_indices = @transform_7, window_bounds = array<i64: 512, 512>}, {pipeline_mode = #tpu.pipeline_mode<synchronous>, transform_indices = @transform_8, window_bounds = array<i64: 1, 512>}, {pipeline_mode = #tpu.pipeline_mode<synchronous>, transform_indices = @transform_9, window_bounds = array<i64: 512, 512>}, {pipeline_mode = #tpu.pipeline_mode<synchronous>, transform_indices = @transform_10, window_bounds = array<i64: 1, 512>}, {transform_indices = @transform_11, window_bounds = array<i64: 8, 512>}]} {
    %c0 = arith.constant 0 : index
    %c0_0 = arith.constant 0 : index
    %0 = vector.load %arg1[%c0, %c0_0] : memref<8x32xf32, #tpu.memory_space<vmem>>, vector<8x32xf32>
    %c0_1 = arith.constant 0 : index
    %c0_2 = arith.constant 0 : index
    %1 = vector.load %arg2[%c0_1, %c0_2] : memref<32x128xf32, #tpu.memory_space<vmem>>, vector<32x128xf32>
    %cst = arith.constant dense<0.000000e+00> : vector<8x128xf32>
    %2 = tpu.matmul %0, %1, %cst {dimension_numbers = #tpu.dot_dimension_numbers<[1], [0], [0], [1], [0, 0, 1, 1], [], []>} : vector<8x32xf32>, vector<32x128xf32>, vector<8x128xf32> -> vector<8x128xf32>
    %c0_3 = arith.constant 0 : index
    %c0_4 = arith.constant 0 : index
    %3 = vector.load %arg3[%c0_3, %c0_4] : memref<1x128xf32, #tpu.memory_space<vmem>>, vector<1x128xf32>
    %4 = vector.broadcast %3 : vector<1x128xf32> to vector<8x128xf32>
    %5 = arith.addf %2, %4 : vector<8x128xf32>
    %cst_5 = arith.constant 0.000000e+00 : f32
    %6 = vector.broadcast %cst_5 : f32 to vector<8x128xf32>
    %7 = arith.maximumf %5, %6 : vector<8x128xf32>
    %8 = arith.truncf %7 : vector<8x128xf32> to vector<8x128xbf16>
    %c0_6 = arith.constant 0 : index
    %c0_7 = arith.constant 0 : index
    %9 = vector.load %arg4[%c0_6, %c0_7] : memref<128x512xbf16, #tpu.memory_space<vmem>>, vector<128x512xbf16>
    %cst_8 = arith.constant dense<0.000000e+00> : vector<8x512xf32>
    %10 = tpu.matmul %8, %9, %cst_8 {dimension_numbers = #tpu.dot_dimension_numbers<[1], [0], [0], [1], [0, 0, 1, 1], [], []>} : vector<8x128xbf16>, vector<128x512xbf16>, vector<8x512xf32> -> vector<8x512xf32>
    %c0_9 = arith.constant 0 : index
    %c0_10 = arith.constant 0 : index
    %11 = vector.load %arg5[%c0_9, %c0_10] : memref<1x512xf32, #tpu.memory_space<vmem>>, vector<1x512xf32>
    %12 = vector.broadcast %11 : vector<1x512xf32> to vector<8x512xf32>
    %13 = arith.addf %10, %12 : vector<8x512xf32>
    %cst_11 = arith.constant 0.000000e+00 : f32
    %14 = vector.broadcast %cst_11 : f32 to vector<8x512xf32>
    %15 = arith.maximumf %13, %14 : vector<8x512xf32>
    %16 = arith.truncf %15 : vector<8x512xf32> to vector<8x512xbf16>
    %c0_12 = arith.constant 0 : index
    %c0_13 = arith.constant 0 : index
    %17 = vector.load %arg6[%c0_12, %c0_13] : memref<512x512xbf16, #tpu.memory_space<vmem>>, vector<512x512xbf16>
    %cst_14 = arith.constant dense<0.000000e+00> : vector<8x512xf32>
    %18 = tpu.matmul %16, %17, %cst_14 {dimension_numbers = #tpu.dot_dimension_numbers<[1], [0], [0], [1], [0, 0, 1, 1], [], []>} : vector<8x512xbf16>, vector<512x512xbf16>, vector<8x512xf32> -> vector<8x512xf32>
    %c0_15 = arith.constant 0 : index
    %c0_16 = arith.constant 0 : index
    %19 = vector.load %arg7[%c0_15, %c0_16] : memref<1x512xf32, #tpu.memory_space<vmem>>, vector<1x512xf32>
    %20 = vector.broadcast %19 : vector<1x512xf32> to vector<8x512xf32>
    %21 = arith.addf %18, %20 : vector<8x512xf32>
    %cst_17 = arith.constant 0.000000e+00 : f32
    %22 = vector.broadcast %cst_17 : f32 to vector<8x512xf32>
    %23 = arith.maximumf %21, %22 : vector<8x512xf32>
    %24 = arith.truncf %23 : vector<8x512xf32> to vector<8x512xbf16>
    %c0_18 = arith.constant 0 : index
    %c0_19 = arith.constant 0 : index
    %25 = vector.load %arg8[%c0_18, %c0_19] : memref<512x512xbf16, #tpu.memory_space<vmem>>, vector<512x512xbf16>
    %cst_20 = arith.constant dense<0.000000e+00> : vector<8x512xf32>
    %26 = tpu.matmul %24, %25, %cst_20 {dimension_numbers = #tpu.dot_dimension_numbers<[1], [0], [0], [1], [0, 0, 1, 1], [], []>} : vector<8x512xbf16>, vector<512x512xbf16>, vector<8x512xf32> -> vector<8x512xf32>
    %c0_21 = arith.constant 0 : index
    %c0_22 = arith.constant 0 : index
    %27 = vector.load %arg9[%c0_21, %c0_22] : memref<1x512xf32, #tpu.memory_space<vmem>>, vector<1x512xf32>
    %28 = vector.broadcast %27 : vector<1x512xf32> to vector<8x512xf32>
    %29 = arith.addf %26, %28 : vector<8x512xf32>
    %cst_23 = arith.constant 0.000000e+00 : f32
    %30 = vector.broadcast %cst_23 : f32 to vector<8x512xf32>
    %31 = arith.maximumf %29, %30 : vector<8x512xf32>
    %32 = arith.truncf %31 : vector<8x512xf32> to vector<8x512xbf16>
    %c0_24 = arith.constant 0 : index
    %c0_25 = arith.constant 0 : index
    %33 = vector.load %arg10[%c0_24, %c0_25] : memref<512x512xbf16, #tpu.memory_space<vmem>>, vector<512x512xbf16>
    %cst_26 = arith.constant dense<0.000000e+00> : vector<8x512xf32>
    %34 = tpu.matmul %32, %33, %cst_26 {dimension_numbers = #tpu.dot_dimension_numbers<[1], [0], [0], [1], [0, 0, 1, 1], [], []>} : vector<8x512xbf16>, vector<512x512xbf16>, vector<8x512xf32> -> vector<8x512xf32>
    %c0_27 = arith.constant 0 : index
    %c0_28 = arith.constant 0 : index
    %35 = vector.load %arg11[%c0_27, %c0_28] : memref<1x512xf32, #tpu.memory_space<vmem>>, vector<1x512xf32>
    %36 = vector.broadcast %35 : vector<1x512xf32> to vector<8x512xf32>
    %37 = arith.addf %34, %36 : vector<8x512xf32>
    %38 = arith.negf %37 : vector<8x512xf32>
    %39 = math.exp %38 : vector<8x512xf32>
    %cst_29 = arith.constant 1.000000e+00 : f32
    %40 = vector.broadcast %cst_29 : f32 to vector<8x512xf32>
    %41 = arith.addf %40, %39 : vector<8x512xf32>
    %42 = arith.divf %40, %41 : vector<8x512xf32>
    %c0_30 = arith.constant 0 : index
    %c0_31 = arith.constant 0 : index
    %43 = vector.load %arg12[%c0_30, %c0_31] : memref<8x512xf32, #tpu.memory_space<vmem>>, vector<8x512xf32>
    tpu.vector_store %arg12[%c0_30, %c0_31], %42 {strides = array<i32>} : memref<8x512xf32, #tpu.memory_space<vmem>>, vector<8x512xf32>,
    return
  }
  func.func @transform_0(%arg0: i32) -> (i32, i32) {
    %c0_i32 = arith.constant 0 : i32
    %c0_i32_0 = arith.constant 0 : i32
    return %arg0, %c0_i32 : i32, i32
  }
  func.func @transform_1(%arg0: i32) -> (i32, i32) {
    %c0_i32 = arith.constant 0 : i32
    %c0_i32_0 = arith.constant 0 : i32
    %c0_i32_1 = arith.constant 0 : i32
    return %c0_i32, %c0_i32_0 : i32, i32
  }
  func.func @transform_2(%arg0: i32) -> (i32, i32) {
    %c0_i32 = arith.constant 0 : i32
    %c0_i32_0 = arith.constant 0 : i32
    %c0_i32_1 = arith.constant 0 : i32
    return %c0_i32, %c0_i32_0 : i32, i32
  }
  func.func @transform_3(%arg0: i32) -> (i32, i32) {
    %c0_i32 = arith.constant 0 : i32
    %c0_i32_0 = arith.constant 0 : i32
    %c0_i32_1 = arith.constant 0 : i32
    return %c0_i32, %c0_i32_0 : i32, i32
  }
  func.func @transform_4(%arg0: i32) -> (i32, i32) {
    %c0_i32 = arith.constant 0 : i32
    %c0_i32_0 = arith.constant 0 : i32
    %c0_i32_1 = arith.constant 0 : i32
    return %c0_i32, %c0_i32_0 : i32, i32
  }
  func.func @transform_5(%arg0: i32) -> (i32, i32) {
    %c0_i32 = arith.constant 0 : i32
    %c0_i32_0 = arith.constant 0 : i32
    %c0_i32_1 = arith.constant 0 : i32
    return %c0_i32, %c0_i32_0 : i32, i32
  }
  func.func @transform_6(%arg0: i32) -> (i32, i32) {
    %c0_i32 = arith.constant 0 : i32
    %c0_i32_0 = arith.constant 0 : i32
    %c0_i32_1 = arith.constant 0 : i32
    return %c0_i32, %c0_i32_0 : i32, i32
  }
  func.func @transform_7(%arg0: i32) -> (i32, i32) {
    %c0_i32 = arith.constant 0 : i32
    %c0_i32_0 = arith.constant 0 : i32
    %c0_i32_1 = arith.constant 0 : i32
    return %c0_i32, %c0_i32_0 : i32, i32
  }
  func.func @transform_8(%arg0: i32) -> (i32, i32) {
    %c0_i32 = arith.constant 0 : i32
    %c0_i32_0 = arith.constant 0 : i32
    %c0_i32_1 = arith.constant 0 : i32
    return %c0_i32, %c0_i32_0 : i32, i32
  }
  func.func @transform_9(%arg0: i32) -> (i32, i32) {
    %c0_i32 = arith.constant 0 : i32
    %c0_i32_0 = arith.constant 0 : i32
    %c0_i32_1 = arith.constant 0 : i32
    return %c0_i32, %c0_i32_0 : i32, i32
  }
  func.func @transform_10(%arg0: i32) -> (i32, i32) {
    %c0_i32 = arith.constant 0 : i32
    %c0_i32_0 = arith.constant 0 : i32
    %c0_i32_1 = arith.constant 0 : i32
    return %c0_i32, %c0_i32_0 : i32, i32
  }
  func.func @transform_11(%arg0: i32) -> (i32, i32) {
    %c0_i32 = arith.constant 0 : i32
    %c0_i32_0 = arith.constant 0 : i32
    return %arg0, %c0_i32 : i32, i32
  }
}

</mosaic_0001>

<bundles_post_ra>
// kernel: tpu_custom_call.1
= control target key start
LH: loop header
LB: loop body
LE: loop exit
PB: predicated region body
PF: predicated region fallthrough
CT: control target
= control target key end

     0   :  { %16 = vsyncpa [#allocation3], 0  ;;  %s4899_s0 = inlined_call_operand.hbm [shape: f32[8,32], index: 0, kind: input, shape index: {}]   ;;  %s4900_s1 = inlined_call_operand.hbm [shape: f32[32,128], index: 1, kind: input, shape index: {}]   ;;  %s4901_s2 = inlined_call_operand.hbm [shape: f32[1,128], index: 2, kind: input, shape index: {}]   ;;  %s4902_s3 = inlined_call_operand.hbm [shape: bf16[128,512], index: 3, kind: input, shape index: {}]   ;;  %s4903_s4 = inlined_call_operand.vmem [shape: f32[1,512], index: 4, kind: input, shape index: {}]   ;;  %s4904_s5 = inlined_call_operand.hbm [shape: bf16[512,512], index: 5, kind: input, shape index: {}]   ;;  %s4905_s6 = inlined_call_operand.vmem [shape: f32[1,512], index: 6, kind: input, shape index: {}]   ;;  %s4906_s7 = inlined_call_operand.hbm [shape: bf16[512,512], index: 7, kind: input, shape index: {}]   ;;  %s4907_s8 = inlined_call_operand.vmem [shape: f32[1,512], index: 8, kind: input, shape index: {}]   ;;  %s4908_s9 = inlined_call_operand.hbm [shape: bf16[512,512], index: 9, kind: input, shape index: {}]   ;;  %s4909_s10 = inlined_call_operand.vmem [shape: f32[1,512], index: 10, kind: input, shape index: {}]   ;;  %s4910_s11 = inlined_call_operand.hbm [shape: f32[8,512], index: 11, kind: output, shape index: {}]  }
   0x1   :  { %17 = vsyncpa [#allocation6], 0 }
   0x2   :  { %18 = vsyncpa [#allocation9], 0 }
   0x3   :  { %19 = vsyncpa [#allocation12], 0 }
   0x4   :  { %20 = vsyncpa [#allocation4], 0  ;;  %s4710_s17 = smov [#allocation5]  }
   0x5   :  { %s36_s18 = sshll.u32 %s4710_s17, 4  ;;  %s37_s18 = int_to_ptr.vmem [resolvable:$true] %s36_s18 }
   0x6   :  { %s4548_s19 = scalar_lea.vmem %s37_s18, 512  ;;  %p4553_p1 = scmp.lt.s32.totalorder %s37_s18, %s37_s18 }
   0x7   :  { %p4549_p0 = scmp.ne.s32.totalorder %s37_s18, %s4548_s19  ;;  %p4554_p2 = scmp.lt.s32.totalorder %s4548_s19, %s4548_s19 }
   0x9   :  { %p4555_p3 = por %p4554_p2, %p4553_p1 }
   0xb   :  { %p4556_p4 = pnand %p4555_p3, %p4549_p0 }
   0xd   :  { %4559 = shalt.err (!%p4556_p4)
}
   0xe   :  { %s4711_s20 = smov 128   ;;  %s4712_s21 = smov 8  }
   0xf   :  { %42 = dma.hbm_to_vmem [thread:$0]  %s4900_s1, 512, %s37_s18, [#allocation6], %s4711_s20, %s4711_s20, %s4712_s21  }
  0x10   :  { %s4713_s24 = smov [#allocation8]  }
  0x11   :  { %s58_s25 = sshll.u32 %s4713_s24, 4  ;;  %s59_s25 = int_to_ptr.vmem [resolvable:$true] %s58_s25 }
  0x12   :  { %s4568_s26 = scalar_lea.vmem %s59_s25, 4096  ;;  %p4573_p6 = scmp.lt.s32.totalorder %s59_s25, %s59_s25 }
  0x13   :  { %p4569_p5 = scmp.ne.s32.totalorder %s59_s25, %s4568_s26  ;;  %p4574_p7 = scmp.lt.s32.totalorder %s4568_s26, %s4568_s26 }
  0x15   :  { %p4575_p8 = por %p4574_p7, %p4573_p6 }
  0x17   :  { %p4576_p9 = pnand %p4575_p8, %p4569_p5 }
  0x19   :  { %4579 = shalt.err (!%p4576_p9)
}
  0x1a   :  { %s4714_s27 = smov 256   ;;  %s4715_s28 = smov 16  }
  0x1b   :  { %64 = dma.hbm_to_vmem [thread:$0]  %s4902_s3, 4096, %s59_s25, [#allocation9], %s4714_s27, %s4714_s27, %s4715_s28  }
  0x1c   :  { %s4716_s1 = smov [#allocation11]   ;;  %s4717_s13 = smov [#allocation2]  }
  0x1d   :  { %s86_s12 = sshll.u32 %s4716_s1, 4  ;;  %s27_s14 = sshll.u32 %s4717_s13, 4  ;;  %s87_s12 = int_to_ptr.vmem [resolvable:$true] %s86_s12  ;;  %s28_s14 = int_to_ptr.vmem [resolvable:$true] %s27_s14 }
  0x1e   :  { %s4588_s15 = scalar_lea.vmem %s87_s12, 16384  ;;  %p4593_p11 = scmp.lt.s32.totalorder %s87_s12, %s87_s12 }
  0x1f   :  { %p4589_p10 = scmp.ne.s32.totalorder %s87_s12, %s4588_s15  ;;  %p4594_p12 = scmp.lt.s32.totalorder %s4588_s15, %s4588_s15 }
  0x21   :  { %p4595_p13 = por %p4594_p12, %p4593_p11 }
  0x23   :  { %p4596_p0 = pnand %p4595_p13, %p4589_p10 }
  0x25   :  { %4599 = shalt.err (!%p4596_p0)
}
  0x26   :  { %92 = dma.hbm_to_vmem [thread:$0]  %s4906_s7, 16384, %s87_s12, [#allocation12], %s4714_s27, %s4714_s27, %s4715_s28  }
  0x27   :  { %s4608_s3 = scalar_lea.vmem %s28_s14, 128  ;;  %p4613_p2 = scmp.lt.s32.totalorder %s28_s14, %s28_s14 }
  0x28   :  { %p4609_p1 = scmp.ne.s32.totalorder %s28_s14, %s4608_s3  ;;  %p4614_p3 = scmp.lt.s32.totalorder %s4608_s3, %s4608_s3 }
  0x2a   :  { %p4615_p4 = por %p4614_p3, %p4613_p2 }
  0x2c   :  { %p4616_p5 = pnand %p4615_p4, %p4609_p1 }
  0x2e   :  { %4619 = shalt.err (!%p4616_p5)
}
  0x2f   :  { %30 = dma.hbm_to_vmem [thread:$0]  %s4899_s0, 128, %s28_s14, [#allocation3]  }
  0x30   :  { %s4718_s20 = smov [#allocation7]   ;;  %s4719_s22 = smov [#allocation10]  }
  0x31   :  { %s49_s21 = sshll.u32 %s4718_s20, 4  ;;  %s72_s23 = sshll.u32 %s4719_s22, 4  ;;  %s50_s21 = int_to_ptr.vmem [resolvable:$true] %s49_s21  ;;  %s73_s23 = int_to_ptr.vmem [resolvable:$true] %s72_s23 }
  0x32   :  { %s4628_s24 = scalar_lea.vmem %s50_s21, 16  ;;  %s4632_s7 = scalar_lea.vmem %s50_s21, 32 }
  0x33   :  { %p4629_p6 = scmp.ne.s32.totalorder %s50_s21, %s4628_s24  ;;  %p4633_p7 = scmp.lt.s32.totalorder %s50_s21, %s50_s21 }
  0x34   :  { %p4634_p8 = scmp.lt.s32.totalorder %s4632_s7, %s4628_s24 }
  0x36   :  { %p4635_p9 = por %p4634_p8, %p4633_p7 }
  0x38   :  { %p4636_p10 = pnand %p4635_p9, %p4629_p6 }
  0x3a   :  { %4639 = shalt.err (!%p4636_p10)
}
  0x3b   :  { %52 = dma.hbm_to_vmem [thread:$0]  %s4901_s2, 16, %s50_s21, [#allocation6]  }
  0x3c   :  { %s4648_s29 = scalar_lea.vmem %s73_s23, 16384  ;;  %p4653_p12 = scmp.lt.s32.totalorder %s73_s23, %s73_s23 }
  0x3d   :  { %p4649_p11 = scmp.ne.s32.totalorder %s73_s23, %s4648_s29  ;;  %p4654_p13 = scmp.lt.s32.totalorder %s4648_s29, %s4648_s29 }
  0x3f   :  { %p4655_p0 = por %p4654_p13, %p4653_p12 }
  0x41   :  { %p4656_p1 = pnand %p4655_p0, %p4649_p11 }
  0x43   :  { %4659 = shalt.err (!%p4656_p1)
}
  0x44   :  { %78 = dma.hbm_to_vmem [thread:$0]  %s4904_s5, 16384, %s73_s23, [#allocation9], %s4714_s27, %s4714_s27, %s4715_s28  }
  0x45   :  { %s4720_s1 = smov [#allocation13]  }
  0x46   :  { %s100_s12 = sshll.u32 %s4720_s1, 4  ;;  %s101_s12 = int_to_ptr.vmem [resolvable:$true] %s100_s12 }
  0x47   :  { %s4668_s13 = scalar_lea.vmem %s101_s12, 16384  ;;  %p4673_p3 = scmp.lt.s32.totalorder %s101_s12, %s101_s12 }
  0x48   :  { %p4669_p2 = scmp.ne.s32.totalorder %s101_s12, %s4668_s13  ;;  %p4674_p4 = scmp.lt.s32.totalorder %s4668_s13, %s4668_s13 }
  0x4a   :  { %p4675_p5 = por %p4674_p4, %p4673_p3 }
  0x4c   :  { %p4676_p6 = pnand %p4675_p5, %p4669_p2 }
  0x4e   :  { %4679 = shalt.err (!%p4676_p6)
}
  0x4f   :  { %106 = dma.hbm_to_vmem [thread:$0]  %s4908_s9, 16384, %s101_s12, [#allocation12], %s4714_s27, %s4714_s27, %s4715_s28  }
  0x50   :  { %4700 = dma.done.wait [#allocation3], 128  }
  0x51   :  { %4701 = vsyncadd [#allocation3], 4294967168 }
  0x52   :  { %4702 = dma.done.wait [#allocation6], 528  }
  0x53   :  { %4703 = vsyncadd [#allocation6], 4294966768 }
  0x54   :  { %4704 = dma.done.wait [#allocation9], 20480  }
  0x55   :  { %4705 = vsyncadd [#allocation9], 4294946816 }
  0x56   :  { %4706 = dma.done.wait [#allocation12], 32768  }
  0x57   :  { %4707 = vsyncadd [#allocation12], 4294934528  ;;  %v4721_v0 = vmov 0.0   ;;  %vm4722_vm0 = vmmov 0   ;;  %v135_v1 = vld [vmem:[#allocation5 + $0x18] sm:$0xff]  ;;  %v134_v2 = vld [vmem:[#allocation5 + $0x10] sm:$0xff] }
  0x58   :  { %3874 = vmatprep.subr.mxu0 %v4721_v0  ;;  %3882 = vmatprep.mubr.msk.f32.mxu0 %vm4722_vm0, %v4721_v0  ;;  %v133_v3 = vld [vmem:[#allocation5 + $0x8] sm:$0xff]  ;;  %v132_v4 = vld [vmem:[#allocation5] sm:$0xff]  ;;  %v131_v6 = vld [vmem:[#allocation2] sm:$0xff]  ;;  %vm143_vm1 = vcmask 261120   ;;  %v4723_v38 = vmov 0  }
  0x59   :  { %3875 = vmatpush3.msra.mxu0 %v135_v1  ;;  %v3900_v5 = vld [vmem:[#allocation8 + $0xe4] ss:$16 sps:$4 sm:$0xff]   ;;  %v3902_v7 = vld [vmem:[#allocation8 + $0xe8] ss:$16 sps:$4 sm:$0xff]   ;;  %v3904_v8 = vld [vmem:[#allocation8 + $0xec] ss:$16 sps:$4 sm:$0xff]   ;;  %465 = vmatprep.mubr.bf16.mxu1 %v4723_v38 }
  0x5a   :  { %3876 = vmatprep.subr.mxu0 %v4721_v0  ;;  %433 = vmatprep.subr.bf16.mxu1 %v3900_v5  ;;  %v3905_v9 = vld [vmem:[#allocation8 + $0xe0] ss:$16 sps:$4 sm:$0xff]   ;;  %v3906_v10 = vld [vmem:[#allocation8 + $0xc4] ss:$16 sps:$4 sm:$0xff]   ;;  %v3910_v11 = vld [vmem:[#allocation8 + $0xcc] ss:$16 sps:$4 sm:$0xff]  }
  0x5b   :  { %3877 = vmatpush3.msra.mxu0 %v134_v2  ;;  %434 = vmatpush1.bf16.msra.mxu1 %v3905_v9  ;;  %v3911_v12 = vld [vmem:[#allocation8 + $0xc0] ss:$16 sps:$4 sm:$0xff]   ;;  %v3912_v13 = vld [vmem:[#allocation8 + $0xa4] ss:$16 sps:$4 sm:$0xff]   ;;  %v3908_v14 = vld [vmem:[#allocation8 + $0xc8] ss:$16 sps:$4 sm:$0xff]  }
  0x5c   :  { %3878 = vmatprep.subr.mxu0 %v4721_v0  ;;  %435 = vmatprep.subr.bf16.mxu1 %v3906_v10  ;;  %v3916_v15 = vld [vmem:[#allocation8 + $0xac] ss:$16 sps:$4 sm:$0xff]   ;;  %v3917_v16 = vld [vmem:[#allocation8 + $0xa0] ss:$16 sps:$4 sm:$0xff]   ;;  %v3918_v17 = vld [vmem:[#allocation8 + $0x84] ss:$16 sps:$4 sm:$0xff]  }
  0x5d   :  { %3879 = vmatpush3.msra.mxu0 %v133_v3  ;;  %v3914_v18 = vld [vmem:[#allocation8 + $0xa8] ss:$16 sps:$4 sm:$0xff]   ;;  %v3922_v19 = vld [vmem:[#allocation8 + $0x8c] ss:$16 sps:$4 sm:$0xff]   ;;  %v3923_v20 = vld [vmem:[#allocation8 + $0x80] ss:$16 sps:$4 sm:$0xff]  }
  0x5e   :  { %3880 = vmatprep.subr.mxu0 %v4721_v0  ;;  %v3924_v21 = vld [vmem:[#allocation8 + $0x64] ss:$16 sps:$4 sm:$0xff]   ;;  %v3920_v22 = vld [vmem:[#allocation8 + $0x88] ss:$16 sps:$4 sm:$0xff]   ;;  %v3928_v23 = vld [vmem:[#allocation8 + $0x6c] ss:$16 sps:$4 sm:$0xff]  }
  0x5f   :  { %3881 = vmatpush3.msra.mxu0 %v132_v4  ;;  %436 = vmatpush1.bf16.msra.mxu1 %v3911_v12  ;;  %v3929_v24 = vld [vmem:[#allocation8 + $0x60] ss:$16 sps:$4 sm:$0xff]   ;;  %v3926_v25 = vld [vmem:[#allocation8 + $0x68] ss:$16 sps:$4 sm:$0xff]   ;;  %v3930_v26 = vld [vmem:[#allocation8 + $0x44] ss:$16 sps:$4 sm:$0xff]  }
  0x60   :  { %3883 = vmatmul.mubr.msk.f32.vlgmr.msra.gmra.mxu0 %vm143_vm1, %v131_v6  ;;  %474 = vmatprep.subr.bf16.mxu0 %v3904_v8  ;;  %v3934_v27 = vld [vmem:[#allocation8 + $0x4c] ss:$16 sps:$4 sm:$0xff]   ;;  %v3935_v28 = vld [vmem:[#allocation8 + $0x40] ss:$16 sps:$4 sm:$0xff]   ;;  %v3936_v29 = vld [vmem:[#allocation8 + $0x24] ss:$16 sps:$4 sm:$0xff]  }
  0x61   :  { %475 = vmatpush1.bf16.msra.mxu0 %v3902_v7  ;;  %437 = vmatprep.subr.bf16.mxu1 %v3912_v13  ;;  %v3932_v30 = vld [vmem:[#allocation8 + $0x48] ss:$16 sps:$4 sm:$0xff]   ;;  %v3940_v31 = vld [vmem:[#allocation8 + $0x2c] ss:$16 sps:$4 sm:$0xff]   ;;  %v3941_v33 = vld [vmem:[#allocation8 + $0x20] ss:$16 sps:$4 sm:$0xff]  }
  0x62   :  { %476 = vmatprep.subr.bf16.mxu0 %v3910_v11  ;;  %v3938_v32 = vld [vmem:[#allocation8 + $0x28] ss:$16 sps:$4 sm:$0xff]   ;;  %v3942_v34 = vld [vmem:[#allocation8 + $0x4] ss:$16 sps:$4 sm:$0xff]   ;;  %v3946_v35 = vld [vmem:[#allocation8 + $0xc] ss:$16 sps:$4 sm:$0xff]   ;;  %506 = vmatprep.mubr.bf16.mxu0 %v4723_v38 }
  0x63   :  { %438 = vmatpush1.bf16.msra.mxu1 %v3917_v16  ;;  %v3944_v36 = vld [vmem:[#allocation8 + $0x8] ss:$16 sps:$4 sm:$0xff]   ;;  %v3947_v37 = vld [vmem:[#allocation8] ss:$16 sps:$4 sm:$0xff]   ;;  %v3950_v39 = vld [vmem:[#allocation10 + $0xe4] ss:$16 sps:$4 sm:$0xff]  }
  0x64   :  { %439 = vmatprep.subr.bf16.mxu1 %v3918_v17  ;;  %v3953_v40 = vld [vmem:[#allocation10 + $0x2e4] ss:$16 sps:$4 sm:$0xff]   ;;  %v3447_v41 = vld [vmem:[#allocation7] ss:$0 sm:$0xff]  ;;  %v3948_v46 = vld [vmem:[#allocation10 + $0xe0] ss:$16 sps:$4 sm:$0xff]  }
  0x65   :  { %477 = vmatpush1.bf16.msra.mxu0 %v3908_v14  ;;  %v3951_v47 = vld [vmem:[#allocation10 + $0x2e0] ss:$16 sps:$4 sm:$0xff]   ;;  %v3956_v49 = vld [vmem:[#allocation10 + $0xc4] ss:$16 sps:$4 sm:$0xff]  }
  0x66   :  { %478 = vmatprep.subr.bf16.mxu0 %v3916_v15  ;;  %v3959_v50 = vld [vmem:[#allocation10 + $0x2c4] ss:$16 sps:$4 sm:$0xff]   ;;  %v3954_v51 = vld [vmem:[#allocation10 + $0xc0] ss:$16 sps:$4 sm:$0xff]  }
  0x67   :  { %440 = vmatpush1.bf16.msra.mxu1 %v3923_v20  ;;  %v3957_v52 = vld [vmem:[#allocation10 + $0x2c0] ss:$16 sps:$4 sm:$0xff]   ;;  %v3962_v53 = vld [vmem:[#allocation10 + $0xa4] ss:$16 sps:$4 sm:$0xff]  }
  0x68   :  { %441 = vmatprep.subr.bf16.mxu1 %v3924_v21  ;;  %v3965_v54 = vld [vmem:[#allocation10 + $0x2a4] ss:$16 sps:$4 sm:$0xff]   ;;  %v3960_v55 = vld [vmem:[#allocation10 + $0xa0] ss:$16 sps:$4 sm:$0xff]  }
  0x69   :  { %479 = vmatpush1.bf16.msra.mxu0 %v3914_v18  ;;  %v3963_v56 = vld [vmem:[#allocation10 + $0x2a0] ss:$16 sps:$4 sm:$0xff]   ;;  %v3968_v57 = vld [vmem:[#allocation10 + $0x84] ss:$16 sps:$4 sm:$0xff]  }
  0x6a   :  { %480 = vmatprep.subr.bf16.mxu0 %v3922_v19  ;;  %v3971_v58 = vld [vmem:[#allocation10 + $0x284] ss:$16 sps:$4 sm:$0xff]   ;;  %v3966_v59 = vld [vmem:[#allocation10 + $0x80] ss:$16 sps:$4 sm:$0xff]  }
  0x6b   :  { %442 = vmatpush1.bf16.msra.mxu1 %v3929_v24  ;;  %v3969_v60 = vld [vmem:[#allocation10 + $0x280] ss:$16 sps:$4 sm:$0xff]   ;;  %v3974_v61 = vld [vmem:[#allocation10 + $0x64] ss:$16 sps:$4 sm:$0xff]  }
  0x6c   :  { %443 = vmatprep.subr.bf16.mxu1 %v3930_v26  ;;  %v3977_v62 = vld [vmem:[#allocation10 + $0x264] ss:$16 sps:$4 sm:$0xff]   ;;  %v3972_v63 = vld [vmem:[#allocation10 + $0x60] ss:$16 sps:$4 sm:$0xff]  }
  0x6d   :  { %481 = vmatpush1.bf16.msra.mxu0 %v3920_v22  ;;  %v3975_v0 = vld [vmem:[#allocation10 + $0x260] ss:$16 sps:$4 sm:$0xff]   ;;  %v3980_v1 = vld [vmem:[#allocation10 + $0x44] ss:$16 sps:$4 sm:$0xff]  }
  0x6e   :  { %482 = vmatprep.subr.bf16.mxu0 %v3928_v23  ;;  %v3983_v2 = vld [vmem:[#allocation10 + $0x244] ss:$16 sps:$4 sm:$0xff]   ;;  %v3978_v3 = vld [vmem:[#allocation10 + $0x40] ss:$16 sps:$4 sm:$0xff]  }
  0x6f   :  { %444 = vmatpush1.bf16.msra.mxu1 %v3935_v28  ;;  %v3981_v4 = vld [vmem:[#allocation10 + $0x240] ss:$16 sps:$4 sm:$0xff]   ;;  %v3986_v5 = vld [vmem:[#allocation10 + $0x24] ss:$16 sps:$4 sm:$0xff]  }
  0x70   :  { %445 = vmatprep.subr.bf16.mxu1 %v3936_v29  ;;  %v3989_v6 = vld [vmem:[#allocation10 + $0x224] ss:$16 sps:$4 sm:$0xff]   ;;  %v3984_v7 = vld [vmem:[#allocation10 + $0x20] ss:$16 sps:$4 sm:$0xff]  }
  0x71   :  { %483 = vmatpush1.bf16.msra.mxu0 %v3926_v25  ;;  %v3987_v8 = vld [vmem:[#allocation10 + $0x220] ss:$16 sps:$4 sm:$0xff]   ;;  %v3992_v9 = vld [vmem:[#allocation10 + $0x4] ss:$16 sps:$4 sm:$0xff]  }
  0x72   :  { %484 = vmatprep.subr.bf16.mxu0 %v3934_v27  ;;  %v3995_v10 = vld [vmem:[#allocation10 + $0x204] ss:$16 sps:$4 sm:$0xff]   ;;  %v3990_v11 = vld [vmem:[#allocation10] ss:$16 sps:$4 sm:$0xff]  }
  0x73   :  { %446 = vmatpush1.bf16.msra.mxu1 %v3941_v33  ;;  %v3993_v12 = vld [vmem:[#allocation10 + $0x200] ss:$16 sps:$4 sm:$0xff]   ;;  %v3998_v13 = vld [vmem:[#allocation10 + $0x1e4] ss:$16 sps:$4 sm:$0xff]  }
  0x74   :  { %447 = vmatprep.subr.bf16.mxu1 %v3942_v34  ;;  %v4001_v14 = vld [vmem:[#allocation10 + $0x3e4] ss:$16 sps:$4 sm:$0xff]   ;;  %v3996_v15 = vld [vmem:[#allocation10 + $0x1e0] ss:$16 sps:$4 sm:$0xff]  }
  0x75   :  { %485 = vmatpush1.bf16.msra.mxu0 %v3932_v30  ;;  %v3999_v16 = vld [vmem:[#allocation10 + $0x3e0] ss:$16 sps:$4 sm:$0xff]   ;;  %v4004_v17 = vld [vmem:[#allocation10 + $0x1c4] ss:$16 sps:$4 sm:$0xff]  }
  0x76   :  { %486 = vmatprep.subr.bf16.mxu0 %v3940_v31  ;;  %v4007_v18 = vld [vmem:[#allocation10 + $0x3c4] ss:$16 sps:$4 sm:$0xff]   ;;  %v4002_v19 = vld [vmem:[#allocation10 + $0x1c0] ss:$16 sps:$4 sm:$0xff]  }
  0x77   :  { %448 = vmatpush1.bf16.msra.mxu1 %v3947_v37  ;;  %v4005_v20 = vld [vmem:[#allocation10 + $0x3c0] ss:$16 sps:$4 sm:$0xff]   ;;  %v4010_v21 = vld [vmem:[#allocation10 + $0x1a4] ss:$16 sps:$4 sm:$0xff]  }
  0x78   :  { %1313 = vmatprep.subr.bf16.mxu1 %v3950_v39  ;;  %v4013_v22 = vld [vmem:[#allocation10 + $0x3a4] ss:$16 sps:$4 sm:$0xff]   ;;  %v4008_v23 = vld [vmem:[#allocation10 + $0x1a0] ss:$16 sps:$4 sm:$0xff]  }
  0x79   :  { %487 = vmatpush1.bf16.msra.mxu0 %v3938_v32  ;;  %v4011_v24 = vld [vmem:[#allocation10 + $0x3a0] ss:$16 sps:$4 sm:$0xff]   ;;  %v4016_v25 = vld [vmem:[#allocation10 + $0x184] ss:$16 sps:$4 sm:$0xff]  }
  0x7a   :  { %488 = vmatprep.subr.bf16.mxu0 %v3946_v35  ;;  %v4019_v26 = vld [vmem:[#allocation10 + $0x384] ss:$16 sps:$4 sm:$0xff]   ;;  %v4014_v27 = vld [vmem:[#allocation10 + $0x180] ss:$16 sps:$4 sm:$0xff]  }
  0x7b   :  { %v4017_v28 = vld [vmem:[#allocation10 + $0x380] ss:$16 sps:$4 sm:$0xff]   ;;  %v4022_v29 = vld [vmem:[#allocation10 + $0x164] ss:$16 sps:$4 sm:$0xff]  }
  0x7c   :  { %v4025_v30 = vld [vmem:[#allocation10 + $0x364] ss:$16 sps:$4 sm:$0xff]   ;;  %v4020_v31 = vld [vmem:[#allocation10 + $0x160] ss:$16 sps:$4 sm:$0xff]  }
  0x7d   :  { %489 = vmatpush1.bf16.msra.mxu0 %v3944_v36  ;;  %v4023_v32 = vld [vmem:[#allocation10 + $0x360] ss:$16 sps:$4 sm:$0xff]   ;;  %v4028_v33 = vld [vmem:[#allocation10 + $0x144] ss:$16 sps:$4 sm:$0xff]  }
  0x7e   :  { %1354 = vmatprep.subr.bf16.mxu0 %v3953_v40  ;;  %v4031_v34 = vld [vmem:[#allocation10 + $0x344] ss:$16 sps:$4 sm:$0xff]   ;;  %v4026_v35 = vld [vmem:[#allocation10 + $0x140] ss:$16 sps:$4 sm:$0xff]  }
  0x7f   :  { %v4029_v36 = vld [vmem:[#allocation10 + $0x340] ss:$16 sps:$4 sm:$0xff]   ;;  %v4034_v37 = vld [vmem:[#allocation10 + $0x124] ss:$16 sps:$4 sm:$0xff]  }
  0x80   :  { %v4037_v38 = vld [vmem:[#allocation10 + $0x324] ss:$16 sps:$4 sm:$0xff]   ;;  %v4032_v39 = vld [vmem:[#allocation10 + $0x120] ss:$16 sps:$4 sm:$0xff]  }
  0x81   :  { %v4035_v40 = vld [vmem:[#allocation10 + $0x320] ss:$16 sps:$4 sm:$0xff]  }
 0x120   :  { %v213_v42 = vpop.f32.mrf.mxu0 }
 0x121   :  { %v214_v43 = vadd.f32 %v3447_v41, %v213_v42  ;;  %v4040_v41 = vld [vmem:[#allocation10 + $0x104] ss:$16 sps:$4 sm:$0xff]  }
 0x122   :  { %v3884_v44 = vpop.f32.mrf.mxu0  ;;  %v4043_v42 = vld [vmem:[#allocation10 + $0x304] ss:$16 sps:$4 sm:$0xff]  }
 0x123   :  { %v217_v45 = vmax.f32 %v214_v43, 0.0  ;;  %v4038_v43 = vld [vmem:[#allocation10 + $0x100] ss:$16 sps:$4 sm:$0xff]  }
 0x124   :  { %v4041_v44 = vld [vmem:[#allocation10 + $0x300] ss:$16 sps:$4 sm:$0xff]  }
 0x125   :  { %v218_v48 = vpack.c.bf16 %v217_v45, %v217_v45  ;;  %v4046_v45 = vld [vmem:[#allocation10 + $0xec] ss:$16 sps:$4 sm:$0xff]  }
 0x127   :  { %466 = vmatmul.mubr.bf16.vlgmr.msra.gmra.mxu1 %v218_v48  ;;  %507 = vmatmul.mubr.bf16.vlgmr.msra.gmra.mxu0 %v218_v48 }
 0x128   :  { %1314 = vmatpush1.bf16.msra.mxu1 %v3948_v46  ;;  %1355 = vmatpush1.bf16.msra.mxu0 %v3951_v47  ;;  %v4049_v46 = vld [vmem:[#allocation10 + $0x2ec] ss:$16 sps:$4 sm:$0xff]   ;;  %v253_v47 = vlaneseq }
 0x129   :  { %1315 = vmatprep.subr.bf16.mxu1 %v3956_v49  ;;  %1356 = vmatprep.subr.bf16.mxu0 %v3959_v50 }
 0x12a   :  { %v254_v48 = vshrl.u32 %v253_v47, 7  ;;  %v4095_v47 = vld [vmem:[#allocation10 + $0x3e8] ss:$16 sps:$4 sm:$0xff]  }
 0x12c   :  { %1316 = vmatpush1.bf16.msra.mxu1 %v3954_v51  ;;  %1357 = vmatpush1.bf16.msra.mxu0 %v3957_v52  ;;  %v4818_v49 = vsub.s32 0, %v254_v48  ;;  %v4820_v50 = vsub.s32 2, %v254_v48  ;;  %v251_v51 = vld [vmem:[%s4903_s4] sm:$0xf]  ;;  %v4825_v52 = vsub.s32 1, %v254_v48 }
 0x12d   :  { %1317 = vmatprep.subr.bf16.mxu1 %v3962_v53  ;;  %1358 = vmatprep.subr.bf16.mxu0 %v3965_v54  ;;  %v4827_v53 = vsub.s32 3, %v254_v48  ;;  %v4100_v48 = vld [vmem:[#allocation10 + $0x1cc] ss:$16 sps:$4 sm:$0xff]  }
 0x12e   :  { %v256_v54 = vrot.slane %v251_v51, %v4818_v49 }
 0x130   :  { %1318 = vmatpush1.bf16.msra.mxu1 %v3960_v55  ;;  %1359 = vmatpush1.bf16.msra.mxu0 %v3963_v56  ;;  %v264_v55 = vrot.slane %v251_v51, %v4820_v50  ;;  %v260_v56 = vrot.slane %v251_v51, %v4825_v52 }
 0x131   :  { %1319 = vmatprep.subr.bf16.mxu1 %v3968_v57  ;;  %1360 = vmatprep.subr.bf16.mxu0 %v3971_v58  ;;  %v268_v57 = vrot.slane %v251_v51, %v4827_v53  ;;  %v4103_v51 = vld [vmem:[#allocation10 + $0x3cc] ss:$16 sps:$4 sm:$0xff]  }
 0x134   :  { %1320 = vmatpush1.bf16.msra.mxu1 %v3966_v59  ;;  %1361 = vmatpush1.bf16.msra.mxu0 %v3969_v60 }
 0x135   :  { %1321 = vmatprep.subr.bf16.mxu1 %v3974_v61  ;;  %1362 = vmatprep.subr.bf16.mxu0 %v3977_v62 }
 0x138   :  { %1322 = vmatpush1.bf16.msra.mxu1 %v3972_v63  ;;  %1363 = vmatpush1.bf16.msra.mxu0 %v3975_v0 }
 0x139   :  { %1323 = vmatprep.subr.bf16.mxu1 %v3980_v1  ;;  %1364 = vmatprep.subr.bf16.mxu0 %v3983_v2 }
 0x13c   :  { %1324 = vmatpush1.bf16.msra.mxu1 %v3978_v3  ;;  %1365 = vmatpush1.bf16.msra.mxu0 %v3981_v4 }
 0x13d   :  { %1325 = vmatprep.subr.bf16.mxu1 %v3986_v5  ;;  %1366 = vmatprep.subr.bf16.mxu0 %v3989_v6 }
 0x140   :  { %1326 = vmatpush1.bf16.msra.mxu1 %v3984_v7  ;;  %1367 = vmatpush1.bf16.msra.mxu0 %v3987_v8 }
 0x141   :  { %1327 = vmatprep.subr.bf16.mxu1 %v3992_v9  ;;  %1368 = vmatprep.subr.bf16.mxu0 %v3995_v10 }
 0x144   :  { %1328 = vmatpush1.bf16.msra.mxu1 %v3990_v11  ;;  %1369 = vmatpush1.bf16.msra.mxu0 %v3993_v12  ;;  %v4044_v12 = vld [vmem:[#allocation10 + $0xe8] ss:$16 sps:$4 sm:$0xff]  }
 0x145   :  { %1329 = vmatprep.subr.bf16.mxu1 %v3998_v13  ;;  %1370 = vmatprep.subr.bf16.mxu0 %v4001_v14  ;;  %v4047_v13 = vld [vmem:[#allocation10 + $0x2e8] ss:$16 sps:$4 sm:$0xff]  }
 0x148   :  { %1330 = vmatpush2.bf16.msra.mxu1 %v3996_v15  ;;  %1371 = vmatpush2.bf16.msra.mxu0 %v3999_v16  ;;  %v4052_v16 = vld [vmem:[#allocation10 + $0xcc] ss:$16 sps:$4 sm:$0xff]  }
 0x149   :  { %1331 = vmatprep.subr.bf16.mxu1 %v4004_v17  ;;  %1372 = vmatprep.subr.bf16.mxu0 %v4007_v18  ;;  %v4055_v17 = vld [vmem:[#allocation10 + $0x2cc] ss:$16 sps:$4 sm:$0xff]   ;;  %v4050_v18 = vld [vmem:[#allocation10 + $0xc8] ss:$16 sps:$4 sm:$0xff]  }
 0x14c   :  { %1332 = vmatpush2.bf16.msra.mxu1 %v4002_v19  ;;  %1373 = vmatpush2.bf16.msra.mxu0 %v4005_v20  ;;  %v4053_v19 = vld [vmem:[#allocation10 + $0x2c8] ss:$16 sps:$4 sm:$0xff]   ;;  %v4058_v20 = vld [vmem:[#allocation10 + $0xac] ss:$16 sps:$4 sm:$0xff]  }
 0x14d   :  { %1333 = vmatprep.subr.bf16.mxu1 %v4010_v21  ;;  %1374 = vmatprep.subr.bf16.mxu0 %v4013_v22  ;;  %v4061_v21 = vld [vmem:[#allocation10 + $0x2ac] ss:$16 sps:$4 sm:$0xff]   ;;  %v4056_v22 = vld [vmem:[#allocation10 + $0xa8] ss:$16 sps:$4 sm:$0xff]  }
 0x150   :  { %1334 = vmatpush2.bf16.msra.mxu1 %v4008_v23  ;;  %1375 = vmatpush2.bf16.msra.mxu0 %v4011_v24  ;;  %v4059_v23 = vld [vmem:[#allocation10 + $0x2a8] ss:$16 sps:$4 sm:$0xff]   ;;  %v4064_v24 = vld [vmem:[#allocation10 + $0x8c] ss:$16 sps:$4 sm:$0xff]  }
 0x151   :  { %1335 = vmatprep.subr.bf16.mxu1 %v4016_v25  ;;  %1376 = vmatprep.subr.bf16.mxu0 %v4019_v26  ;;  %v4067_v25 = vld [vmem:[#allocation10 + $0x28c] ss:$16 sps:$4 sm:$0xff]   ;;  %v4062_v26 = vld [vmem:[#allocation10 + $0x88] ss:$16 sps:$4 sm:$0xff]  }
 0x154   :  { %1336 = vmatpush2.bf16.msra.mxu1 %v4014_v27  ;;  %1377 = vmatpush2.bf16.msra.mxu0 %v4017_v28  ;;  %v4065_v27 = vld [vmem:[#allocation10 + $0x288] ss:$16 sps:$4 sm:$0xff]   ;;  %v4070_v28 = vld [vmem:[#allocation10 + $0x6c] ss:$16 sps:$4 sm:$0xff]  }
 0x155   :  { %1337 = vmatprep.subr.bf16.mxu1 %v4022_v29  ;;  %1378 = vmatprep.subr.bf16.mxu0 %v4025_v30  ;;  %v4073_v29 = vld [vmem:[#allocation10 + $0x26c] ss:$16 sps:$4 sm:$0xff]   ;;  %v4068_v30 = vld [vmem:[#allocation10 + $0x68] ss:$16 sps:$4 sm:$0xff]  }
 0x158   :  { %1338 = vmatpush2.bf16.msra.mxu1 %v4020_v31  ;;  %1379 = vmatpush2.bf16.msra.mxu0 %v4023_v32  ;;  %v4071_v31 = vld [vmem:[#allocation10 + $0x268] ss:$16 sps:$4 sm:$0xff]   ;;  %v4076_v32 = vld [vmem:[#allocation10 + $0x4c] ss:$16 sps:$4 sm:$0xff]  }
 0x159   :  { %1339 = vmatprep.subr.bf16.mxu1 %v4028_v33  ;;  %1380 = vmatprep.subr.bf16.mxu0 %v4031_v34  ;;  %v4079_v33 = vld [vmem:[#allocation10 + $0x24c] ss:$16 sps:$4 sm:$0xff]   ;;  %v4074_v34 = vld [vmem:[#allocation10 + $0x48] ss:$16 sps:$4 sm:$0xff]  }
 0x15c   :  { %1340 = vmatpush2.bf16.msra.mxu1 %v4026_v35  ;;  %1381 = vmatpush2.bf16.msra.mxu0 %v4029_v36  ;;  %v4077_v35 = vld [vmem:[#allocation10 + $0x248] ss:$16 sps:$4 sm:$0xff]   ;;  %v4082_v36 = vld [vmem:[#allocation10 + $0x2c] ss:$16 sps:$4 sm:$0xff]  }
 0x15d   :  { %1341 = vmatprep.subr.bf16.mxu1 %v4034_v37  ;;  %1382 = vmatprep.subr.bf16.mxu0 %v4037_v38  ;;  %v4085_v37 = vld [vmem:[#allocation10 + $0x22c] ss:$16 sps:$4 sm:$0xff]   ;;  %v4080_v38 = vld [vmem:[#allocation10 + $0x28] ss:$16 sps:$4 sm:$0xff]  }
 0x160   :  { %1342 = vmatpush2.bf16.msra.mxu1 %v4032_v39  ;;  %1383 = vmatpush2.bf16.msra.mxu0 %v4035_v40  ;;  %v4083_v39 = vld [vmem:[#allocation10 + $0x228] ss:$16 sps:$4 sm:$0xff]   ;;  %v4088_v40 = vld [vmem:[#allocation10 + $0xc] ss:$16 sps:$4 sm:$0xff]  }
 0x161   :  { %1343 = vmatprep.subr.bf16.mxu1 %v4040_v41  ;;  %1384 = vmatprep.subr.bf16.mxu0 %v4043_v42  ;;  %v4091_v41 = vld [vmem:[#allocation10 + $0x20c] ss:$16 sps:$4 sm:$0xff]   ;;  %v4086_v42 = vld [vmem:[#allocation10 + $0x8] ss:$16 sps:$4 sm:$0xff]  }
 0x164   :  { %1344 = vmatpush2.bf16.msra.mxu1 %v4038_v43  ;;  %1385 = vmatpush2.bf16.msra.mxu0 %v4041_v44  ;;  %v4089_v43 = vld [vmem:[#allocation10 + $0x208] ss:$16 sps:$4 sm:$0xff]   ;;  %v4094_v44 = vld [vmem:[#allocation10 + $0x1ec] ss:$16 sps:$4 sm:$0xff]  }
 0x165   :  { %1395 = vmatprep.subr.bf16.mxu1 %v4046_v45  ;;  %1436 = vmatprep.subr.bf16.mxu0 %v4049_v46  ;;  %v4097_v45 = vld [vmem:[#allocation10 + $0x3ec] ss:$16 sps:$4 sm:$0xff]   ;;  %v4092_v46 = vld [vmem:[#allocation10 + $0x1e8] ss:$16 sps:$4 sm:$0xff]  }
 0x1e7   :  { %v467_v58 = vpop.f32.mrf.mxu1  ;;  %v508_v59 = vpop.f32.mrf.mxu0 }
 0x1e8   :  { %v468_v60 = vadd.f32 %v467_v58, %v256_v54  ;;  %v509_v61 = vadd.f32 %v508_v59, %v264_v55  ;;  %v4098_v54 = vld [vmem:[#allocation10 + $0x1c8] ss:$16 sps:$4 sm:$0xff]  }
 0x1e9   :  { %v469_v62 = vpop.f32.mrf.mxu1  ;;  %v510_v63 = vpop.f32.mrf.mxu0  ;;  %v4101_v55 = vld [vmem:[#allocation10 + $0x3c8] ss:$16 sps:$4 sm:$0xff]  }
 0x1ea   :  { %v470_v0 = vadd.f32 %v469_v62, %v260_v56  ;;  %v511_v1 = vadd.f32 %v510_v63, %v268_v57  ;;  %v515_v2 = vmax.f32 %v468_v60, 0.0  ;;  %v517_v3 = vmax.f32 %v509_v61, 0.0  ;;  %v4106_v56 = vld [vmem:[#allocation10 + $0x1ac] ss:$16 sps:$4 sm:$0xff]   ;;  %v4104_v58 = vld [vmem:[#allocation10 + $0x1a8] ss:$16 sps:$4 sm:$0xff]  }
 0x1eb   :  { %v471_v4 = vpop.f32.mrf.mxu1  ;;  %v512_v5 = vpop.f32.mrf.mxu0  ;;  %v4109_v57 = vld [vmem:[#allocation10 + $0x3ac] ss:$16 sps:$4 sm:$0xff]   ;;  %v4107_v59 = vld [vmem:[#allocation10 + $0x3a8] ss:$16 sps:$4 sm:$0xff]  }
 0x1ec   :  { %v516_v6 = vmax.f32 %v470_v0, 0.0  ;;  %v518_v7 = vmax.f32 %v511_v1, 0.0  ;;  %v4833_v14 = vpack.c.bf16 %v515_v2, %v515_v2  ;;  %v4835_v15 = vpack.c.bf16 %v517_v3, %v517_v3  ;;  %v4112_v60 = vld [vmem:[#allocation10 + $0x18c] ss:$16 sps:$4 sm:$0xff]   ;;  %v4110_v62 = vld [vmem:[#allocation10 + $0x188] ss:$16 sps:$4 sm:$0xff]  }
 0x1ed   :  { %v472_v8 = vpop.f32.mrf.mxu1  ;;  %v513_v9 = vpop.f32.mrf.mxu0  ;;  %v4115_v61 = vld [vmem:[#allocation10 + $0x38c] ss:$16 sps:$4 sm:$0xff]   ;;  %v4113_v63 = vld [vmem:[#allocation10 + $0x388] ss:$16 sps:$4 sm:$0xff]  }
 0x1ee   :  { %v520_v10 = vpack.c.bf16 %v516_v6, %v516_v6  ;;  %v522_v11 = vpack.c.bf16 %v518_v7, %v518_v7  ;;  %v4118_v0 = vld [vmem:[#allocation10 + $0x16c] ss:$16 sps:$4 sm:$0xff]   ;;  %v4116_v2 = vld [vmem:[#allocation10 + $0x168] ss:$16 sps:$4 sm:$0xff]  }
 0x1ef   :  { %v4121_v1 = vld [vmem:[#allocation10 + $0x36c] ss:$16 sps:$4 sm:$0xff]   ;;  %v4119_v3 = vld [vmem:[#allocation10 + $0x368] ss:$16 sps:$4 sm:$0xff]  }
 0x1f0   :  { %1345 = vmatprep.mubr.bf16.mxu1 %v520_v10  ;;  %1386 = vmatprep.mubr.bf16.mxu0 %v522_v11  ;;  %v4124_v4 = vld [vmem:[#allocation10 + $0x14c] ss:$16 sps:$4 sm:$0xff]   ;;  %v4122_v6 = vld [vmem:[#allocation10 + $0x148] ss:$16 sps:$4 sm:$0xff]  }
 0x1f1   :  { %1346 = vmatmul.mubr.bf16.vlgmr.msra.gmra.mxu1 %v4833_v14  ;;  %1387 = vmatmul.mubr.bf16.vlgmr.msra.gmra.mxu0 %v4835_v15  ;;  %v4127_v5 = vld [vmem:[#allocation10 + $0x34c] ss:$16 sps:$4 sm:$0xff]   ;;  %v4125_v7 = vld [vmem:[#allocation10 + $0x348] ss:$16 sps:$4 sm:$0xff]  }
 0x1f2   :  { %1396 = vmatpush1.bf16.msra.mxu1 %v4044_v12  ;;  %1437 = vmatpush1.bf16.msra.mxu0 %v4047_v13  ;;  %v4130_v8 = vld [vmem:[#allocation10 + $0x12c] ss:$16 sps:$4 sm:$0xff]  }
 0x1f3   :  { %1427 = vmatprep.mubr.bf16.mxu1 %v520_v10  ;;  %1468 = vmatprep.mubr.bf16.mxu0 %v522_v11  ;;  %v4133_v9 = vld [vmem:[#allocation10 + $0x32c] ss:$16 sps:$4 sm:$0xff]   ;;  %v4128_v10 = vld [vmem:[#allocation10 + $0x128] ss:$16 sps:$4 sm:$0xff]  }
 0x1f4   :  { %1397 = vmatprep.subr.bf16.mxu1 %v4052_v16  ;;  %1438 = vmatprep.subr.bf16.mxu0 %v4055_v17  ;;  %v4131_v11 = vld [vmem:[#allocation10 + $0x328] ss:$16 sps:$4 sm:$0xff]   ;;  %v4136_v12 = vld [vmem:[#allocation10 + $0x10c] ss:$16 sps:$4 sm:$0xff]  }
 0x1f5   :  { %v4139_v13 = vld [vmem:[#allocation10 + $0x30c] ss:$16 sps:$4 sm:$0xff]   ;;  %v4134_v16 = vld [vmem:[#allocation10 + $0x108] ss:$16 sps:$4 sm:$0xff]  }
 0x1f6   :  { %1398 = vmatpush1.bf16.msra.mxu1 %v4050_v18  ;;  %1439 = vmatpush1.bf16.msra.mxu0 %v4053_v19  ;;  %v4137_v17 = vld [vmem:[#allocation10 + $0x308] ss:$16 sps:$4 sm:$0xff]   ;;  %v4142_v18 = vld [vmem:[#allocation11 + $0xe4] ss:$16 sps:$4 sm:$0xff]   ;;  %v4140_v19 = vld [vmem:[#allocation11 + $0xe0] ss:$16 sps:$4 sm:$0xff]  }
 0x1f7   :  { %1399 = vmatprep.subr.bf16.mxu1 %v4058_v20  ;;  %1440 = vmatprep.subr.bf16.mxu0 %v4061_v21  ;;  %v4145_v20 = vld [vmem:[#allocation11 + $0xc4] ss:$16 sps:$4 sm:$0xff]   ;;  %v4143_v21 = vld [vmem:[#allocation11 + $0xc0] ss:$16 sps:$4 sm:$0xff]  }
 0x1fa   :  { %1400 = vmatpush1.bf16.msra.mxu1 %v4056_v22  ;;  %1441 = vmatpush1.bf16.msra.mxu0 %v4059_v23  ;;  %v4148_v22 = vld [vmem:[#allocation11 + $0xa4] ss:$16 sps:$4 sm:$0xff]   ;;  %v4146_v23 = vld [vmem:[#allocation11 + $0xa0] ss:$16 sps:$4 sm:$0xff]  }
 0x1fb   :  { %1401 = vmatprep.subr.bf16.mxu1 %v4064_v24  ;;  %1442 = vmatprep.subr.bf16.mxu0 %v4067_v25  ;;  %v4151_v24 = vld [vmem:[#allocation11 + $0x84] ss:$16 sps:$4 sm:$0xff]   ;;  %v4149_v25 = vld [vmem:[#allocation11 + $0x80] ss:$16 sps:$4 sm:$0xff]  }
 0x1fe   :  { %1402 = vmatpush1.bf16.msra.mxu1 %v4062_v26  ;;  %1443 = vmatpush1.bf16.msra.mxu0 %v4065_v27  ;;  %v4188_v26 = vld [vmem:[#allocation11 + $0x2e0] ss:$16 sps:$4 sm:$0xff]   ;;  %v4190_v27 = vld [vmem:[#allocation11 + $0x2e4] ss:$16 sps:$4 sm:$0xff]  }
 0x1ff   :  { %1403 = vmatprep.subr.bf16.mxu1 %v4070_v28  ;;  %1444 = vmatprep.subr.bf16.mxu0 %v4073_v29  ;;  %v4154_v28 = vld [vmem:[#allocation11 + $0x64] ss:$16 sps:$4 sm:$0xff]   ;;  %v4194_v29 = vld [vmem:[#allocation11 + $0x2c0] ss:$16 sps:$4 sm:$0xff]  }
 0x202   :  { %1404 = vmatpush1.bf16.msra.mxu1 %v4068_v30  ;;  %1445 = vmatpush1.bf16.msra.mxu0 %v4071_v31  ;;  %v4157_v30 = vld [vmem:[#allocation11 + $0x44] ss:$16 sps:$4 sm:$0xff]   ;;  %v4155_v31 = vld [vmem:[#allocation11 + $0x40] ss:$16 sps:$4 sm:$0xff]  }
 0x203   :  { %1405 = vmatprep.subr.bf16.mxu1 %v4076_v32  ;;  %1446 = vmatprep.subr.bf16.mxu0 %v4079_v33  ;;  %v4200_v32 = vld [vmem:[#allocation11 + $0x2a0] ss:$16 sps:$4 sm:$0xff]   ;;  %v4202_v33 = vld [vmem:[#allocation11 + $0x2a4] ss:$16 sps:$4 sm:$0xff]  }
 0x206   :  { %1406 = vmatpush1.bf16.msra.mxu1 %v4074_v34  ;;  %1447 = vmatpush1.bf16.msra.mxu0 %v4077_v35  ;;  %v4160_v34 = vld [vmem:[#allocation11 + $0x24] ss:$16 sps:$4 sm:$0xff]   ;;  %v4158_v35 = vld [vmem:[#allocation11 + $0x20] ss:$16 sps:$4 sm:$0xff]  }
 0x207   :  { %1407 = vmatprep.subr.bf16.mxu1 %v4082_v36  ;;  %1448 = vmatprep.subr.bf16.mxu0 %v4085_v37  ;;  %v4206_v36 = vld [vmem:[#allocation11 + $0x280] ss:$16 sps:$4 sm:$0xff]   ;;  %v4208_v37 = vld [vmem:[#allocation11 + $0x284] ss:$16 sps:$4 sm:$0xff]  }
 0x20a   :  { %1408 = vmatpush1.bf16.msra.mxu1 %v4080_v38  ;;  %1449 = vmatpush1.bf16.msra.mxu0 %v4083_v39  ;;  %v4163_v38 = vld [vmem:[#allocation11 + $0x4] ss:$16 sps:$4 sm:$0xff]   ;;  %v4161_v39 = vld [vmem:[#allocation11] ss:$16 sps:$4 sm:$0xff]  }
 0x20b   :  { %1409 = vmatprep.subr.bf16.mxu1 %v4088_v40  ;;  %1450 = vmatprep.subr.bf16.mxu0 %v4091_v41  ;;  %v4212_v40 = vld [vmem:[#allocation11 + $0x260] ss:$16 sps:$4 sm:$0xff]   ;;  %v4214_v41 = vld [vmem:[#allocation11 + $0x264] ss:$16 sps:$4 sm:$0xff]  }
 0x20e   :  { %1410 = vmatpush1.bf16.msra.mxu1 %v4086_v42  ;;  %1451 = vmatpush1.bf16.msra.mxu0 %v4089_v43  ;;  %v4166_v42 = vld [vmem:[#allocation11 + $0x1e4] ss:$16 sps:$4 sm:$0xff]   ;;  %v4164_v43 = vld [vmem:[#allocation11 + $0x1e0] ss:$16 sps:$4 sm:$0xff]  }
 0x20f   :  { %1411 = vmatprep.subr.bf16.mxu1 %v4094_v44  ;;  %1452 = vmatprep.subr.bf16.mxu0 %v4097_v45  ;;  %v4218_v44 = vld [vmem:[#allocation11 + $0x240] ss:$16 sps:$4 sm:$0xff]   ;;  %v4220_v45 = vld [vmem:[#allocation11 + $0x244] ss:$16 sps:$4 sm:$0xff]  }
 0x212   :  { %1412 = vmatpush2.bf16.msra.mxu1 %v4092_v46  ;;  %1453 = vmatpush2.bf16.msra.mxu0 %v4095_v47  ;;  %v4169_v46 = vld [vmem:[#allocation11 + $0x1c4] ss:$16 sps:$4 sm:$0xff]   ;;  %v4167_v47 = vld [vmem:[#allocation11 + $0x1c0] ss:$16 sps:$4 sm:$0xff]  }
 0x213   :  { %1413 = vmatprep.subr.bf16.mxu1 %v4100_v48  ;;  %1454 = vmatprep.subr.bf16.mxu0 %v4103_v51  ;;  %v4224_v48 = vld [vmem:[#allocation11 + $0x220] ss:$16 sps:$4 sm:$0xff]   ;;  %v4226_v51 = vld [vmem:[#allocation11 + $0x224] ss:$16 sps:$4 sm:$0xff]  }
 0x216   :  { %1414 = vmatpush2.bf16.msra.mxu1 %v4098_v54  ;;  %1455 = vmatpush2.bf16.msra.mxu0 %v4101_v55  ;;  %v4172_v54 = vld [vmem:[#allocation11 + $0x1a4] ss:$16 sps:$4 sm:$0xff]   ;;  %v4170_v55 = vld [vmem:[#allocation11 + $0x1a0] ss:$16 sps:$4 sm:$0xff]  }
 0x217   :  { %1415 = vmatprep.subr.bf16.mxu1 %v4106_v56  ;;  %1456 = vmatprep.subr.bf16.mxu0 %v4109_v57  ;;  %v4230_v56 = vld [vmem:[#allocation11 + $0x200] ss:$16 sps:$4 sm:$0xff]   ;;  %v4232_v57 = vld [vmem:[#allocation11 + $0x204] ss:$16 sps:$4 sm:$0xff]  }
 0x21a   :  { %1416 = vmatpush2.bf16.msra.mxu1 %v4104_v58  ;;  %1457 = vmatpush2.bf16.msra.mxu0 %v4107_v59  ;;  %v4175_v58 = vld [vmem:[#allocation11 + $0x184] ss:$16 sps:$4 sm:$0xff]   ;;  %v4173_v59 = vld [vmem:[#allocation11 + $0x180] ss:$16 sps:$4 sm:$0xff]  }
 0x21b   :  { %1417 = vmatprep.subr.bf16.mxu1 %v4112_v60  ;;  %1458 = vmatprep.subr.bf16.mxu0 %v4115_v61  ;;  %v4236_v60 = vld [vmem:[#allocation11 + $0x3e0] ss:$16 sps:$4 sm:$0xff]   ;;  %v4238_v61 = vld [vmem:[#allocation11 + $0x3e4] ss:$16 sps:$4 sm:$0xff]  }
 0x21e   :  { %1418 = vmatpush2.bf16.msra.mxu1 %v4110_v62  ;;  %1459 = vmatpush2.bf16.msra.mxu0 %v4113_v63  ;;  %v4178_v62 = vld [vmem:[#allocation11 + $0x164] ss:$16 sps:$4 sm:$0xff]   ;;  %v4176_v63 = vld [vmem:[#allocation11 + $0x160] ss:$16 sps:$4 sm:$0xff]  }
 0x21f   :  { %1419 = vmatprep.subr.bf16.mxu1 %v4118_v0  ;;  %1460 = vmatprep.subr.bf16.mxu0 %v4121_v1  ;;  %v4242_v0 = vld [vmem:[#allocation11 + $0x3c0] ss:$16 sps:$4 sm:$0xff]   ;;  %v4244_v1 = vld [vmem:[#allocation11 + $0x3c4] ss:$16 sps:$4 sm:$0xff]  }
 0x222   :  { %1420 = vmatpush2.bf16.msra.mxu1 %v4116_v2  ;;  %1461 = vmatpush2.bf16.msra.mxu0 %v4119_v3  ;;  %v4181_v2 = vld [vmem:[#allocation11 + $0x144] ss:$16 sps:$4 sm:$0xff]   ;;  %v4179_v3 = vld [vmem:[#allocation11 + $0x140] ss:$16 sps:$4 sm:$0xff]  }
 0x223   :  { %1421 = vmatprep.subr.bf16.mxu1 %v4124_v4  ;;  %1462 = vmatprep.subr.bf16.mxu0 %v4127_v5  ;;  %v4248_v4 = vld [vmem:[#allocation11 + $0x3a0] ss:$16 sps:$4 sm:$0xff]   ;;  %v4250_v5 = vld [vmem:[#allocation11 + $0x3a4] ss:$16 sps:$4 sm:$0xff]  }
 0x226   :  { %1422 = vmatpush2.bf16.msra.mxu1 %v4122_v6  ;;  %1463 = vmatpush2.bf16.msra.mxu0 %v4125_v7  ;;  %v4184_v6 = vld [vmem:[#allocation11 + $0x124] ss:$16 sps:$4 sm:$0xff]   ;;  %v4182_v7 = vld [vmem:[#allocation11 + $0x120] ss:$16 sps:$4 sm:$0xff]  }
 0x227   :  { %1423 = vmatprep.subr.bf16.mxu1 %v4130_v8  ;;  %1464 = vmatprep.subr.bf16.mxu0 %v4133_v9  ;;  %v4254_v8 = vld [vmem:[#allocation11 + $0x380] ss:$16 sps:$4 sm:$0xff]   ;;  %v4256_v9 = vld [vmem:[#allocation11 + $0x384] ss:$16 sps:$4 sm:$0xff]  }
 0x22a   :  { %1424 = vmatpush2.bf16.msra.mxu1 %v4128_v10  ;;  %1465 = vmatpush2.bf16.msra.mxu0 %v4131_v11  ;;  %v4187_v10 = vld [vmem:[#allocation11 + $0x104] ss:$16 sps:$4 sm:$0xff]   ;;  %v4185_v11 = vld [vmem:[#allocation11 + $0x100] ss:$16 sps:$4 sm:$0xff]  }
 0x22b   :  { %1425 = vmatprep.subr.bf16.mxu1 %v4136_v12  ;;  %1466 = vmatprep.subr.bf16.mxu0 %v4139_v13  ;;  %v4260_v12 = vld [vmem:[#allocation11 + $0x360] ss:$16 sps:$4 sm:$0xff]   ;;  %v4262_v13 = vld [vmem:[#allocation11 + $0x364] ss:$16 sps:$4 sm:$0xff]  }
 0x22e   :  { %1426 = vmatpush2.bf16.msra.mxu1 %v4134_v16  ;;  %1467 = vmatpush2.bf16.msra.mxu0 %v4137_v17  ;;  %v4193_v16 = vld [vmem:[#allocation11 + $0xec] ss:$16 sps:$4 sm:$0xff]   ;;  %v4266_v17 = vld [vmem:[#allocation11 + $0x340] ss:$16 sps:$4 sm:$0xff]  }
 0x22f   :  { %2275 = vmatprep.subr.bf16.mxu1 %v4142_v18  ;;  %2316 = vmatprep.subr.bf16.mxu0 %v4190_v27  ;;  %v4268_v18 = vld [vmem:[#allocation11 + $0x344] ss:$16 sps:$4 sm:$0xff]  }
 0x231   :  { %1428 = vmatmul.mubr.bf16.vlgmr.msra.gmra.mxu1 %v4833_v14  ;;  %1469 = vmatmul.mubr.bf16.vlgmr.msra.gmra.mxu0 %v4835_v15  ;;  %v4152_v14 = vld [vmem:[#allocation11 + $0x60] ss:$16 sps:$4 sm:$0xff]   ;;  %v4196_v15 = vld [vmem:[#allocation11 + $0x2c4] ss:$16 sps:$4 sm:$0xff]  }
 0x232   :  { %2276 = vmatpush1.bf16.msra.mxu1 %v4140_v19  ;;  %2317 = vmatpush1.bf16.msra.mxu0 %v4188_v26  ;;  %v4274_v19 = vld [vmem:[#allocation11 + $0x324] ss:$16 sps:$4 sm:$0xff]  }
 0x233   :  { %2277 = vmatprep.subr.bf16.mxu1 %v4145_v20  ;;  %2318 = vmatprep.subr.bf16.mxu0 %v4196_v15  ;;  %v4272_v20 = vld [vmem:[#allocation11 + $0x320] ss:$16 sps:$4 sm:$0xff]  }
 0x236   :  { %2278 = vmatpush1.bf16.msra.mxu1 %v4143_v21  ;;  %2319 = vmatpush1.bf16.msra.mxu0 %v4194_v29  ;;  %v4280_v21 = vld [vmem:[#allocation11 + $0x304] ss:$16 sps:$4 sm:$0xff]  }
 0x237   :  { %2279 = vmatprep.subr.bf16.mxu1 %v4148_v22  ;;  %2320 = vmatprep.subr.bf16.mxu0 %v4202_v33  ;;  %v4278_v22 = vld [vmem:[#allocation11 + $0x300] ss:$16 sps:$4 sm:$0xff]  }
 0x23a   :  { %2280 = vmatpush1.bf16.msra.mxu1 %v4146_v23  ;;  %2321 = vmatpush1.bf16.msra.mxu0 %v4200_v32  ;;  %v4286_v23 = vld [vmem:[#allocation11 + $0x2ec] ss:$16 sps:$4 sm:$0xff]  }
 0x23b   :  { %2281 = vmatprep.subr.bf16.mxu1 %v4151_v24  ;;  %2322 = vmatprep.subr.bf16.mxu0 %v4208_v37  ;;  %v4844_v24 = vld [vmem:[%s4905_s6] sm:$0xf] }
 0x23c   :  { %v660_v26 = vrot.slane %v4844_v24, %v4825_v52 }
 0x23e   :  { %2282 = vmatpush1.bf16.msra.mxu1 %v4149_v25  ;;  %2323 = vmatpush1.bf16.msra.mxu0 %v4206_v36  ;;  %v656_v25 = vrot.slane %v4844_v24, %v4818_v49 }
 0x23f   :  { %2283 = vmatprep.subr.bf16.mxu1 %v4154_v28  ;;  %2324 = vmatprep.subr.bf16.mxu0 %v4214_v41 }
 0x242   :  { %2284 = vmatpush1.bf16.msra.mxu1 %v4152_v14  ;;  %2325 = vmatpush1.bf16.msra.mxu0 %v4212_v40  ;;  %v4191_v40 = vld [vmem:[#allocation11 + $0xe8] ss:$16 sps:$4 sm:$0xff]  }
 0x243   :  { %2285 = vmatprep.subr.bf16.mxu1 %v4157_v30  ;;  %2326 = vmatprep.subr.bf16.mxu0 %v4220_v45  ;;  %v4203_v45 = vld [vmem:[#allocation11 + $0xa8] ss:$16 sps:$4 sm:$0xff]  }
 0x246   :  { %2286 = vmatpush1.bf16.msra.mxu1 %v4155_v31  ;;  %2327 = vmatpush1.bf16.msra.mxu0 %v4218_v44  ;;  %v4205_v44 = vld [vmem:[#allocation11 + $0xac] ss:$16 sps:$4 sm:$0xff]  }
 0x247   :  { %2287 = vmatprep.subr.bf16.mxu1 %v4160_v34  ;;  %2328 = vmatprep.subr.bf16.mxu0 %v4226_v51  ;;  %v4215_v51 = vld [vmem:[#allocation11 + $0x68] ss:$16 sps:$4 sm:$0xff]  }
 0x24a   :  { %2288 = vmatpush1.bf16.msra.mxu1 %v4158_v35  ;;  %2329 = vmatpush1.bf16.msra.mxu0 %v4224_v48  ;;  %v4217_v48 = vld [vmem:[#allocation11 + $0x6c] ss:$16 sps:$4 sm:$0xff]  }
 0x24b   :  { %2289 = vmatprep.subr.bf16.mxu1 %v4163_v38  ;;  %2330 = vmatprep.subr.bf16.mxu0 %v4232_v57  ;;  %v4227_v57 = vld [vmem:[#allocation11 + $0x28] ss:$16 sps:$4 sm:$0xff]  }
 0x24e   :  { %2290 = vmatpush1.bf16.msra.mxu1 %v4161_v39  ;;  %2331 = vmatpush1.bf16.msra.mxu0 %v4230_v56  ;;  %v4229_v56 = vld [vmem:[#allocation11 + $0x2c] ss:$16 sps:$4 sm:$0xff]  }
 0x24f   :  { %2291 = vmatprep.subr.bf16.mxu1 %v4166_v42  ;;  %2332 = vmatprep.subr.bf16.mxu0 %v4238_v61  ;;  %v4199_v42 = vld [vmem:[#allocation11 + $0xcc] ss:$16 sps:$4 sm:$0xff]   ;;  %v4239_v61 = vld [vmem:[#allocation11 + $0x1e8] ss:$16 sps:$4 sm:$0xff]  }
 0x252   :  { %2292 = vmatpush2.bf16.msra.mxu1 %v4164_v43  ;;  %2333 = vmatpush2.bf16.msra.mxu0 %v4236_v60  ;;  %v4197_v43 = vld [vmem:[#allocation11 + $0xc8] ss:$16 sps:$4 sm:$0xff]   ;;  %v4241_v60 = vld [vmem:[#allocation11 + $0x1ec] ss:$16 sps:$4 sm:$0xff]  }
 0x253   :  { %2293 = vmatprep.subr.bf16.mxu1 %v4169_v46  ;;  %2334 = vmatprep.subr.bf16.mxu0 %v4244_v1  ;;  %v4211_v46 = vld [vmem:[#allocation11 + $0x8c] ss:$16 sps:$4 sm:$0xff]   ;;  %v4251_v1 = vld [vmem:[#allocation11 + $0x1a8] ss:$16 sps:$4 sm:$0xff]  }
 0x256   :  { %2294 = vmatpush2.bf16.msra.mxu1 %v4167_v47  ;;  %2335 = vmatpush2.bf16.msra.mxu0 %v4242_v0  ;;  %v4209_v47 = vld [vmem:[#allocation11 + $0x88] ss:$16 sps:$4 sm:$0xff]   ;;  %v4253_v0 = vld [vmem:[#allocation11 + $0x1ac] ss:$16 sps:$4 sm:$0xff]  }
 0x257   :  { %2295 = vmatprep.subr.bf16.mxu1 %v4172_v54  ;;  %2336 = vmatprep.subr.bf16.mxu0 %v4250_v5  ;;  %v4223_v54 = vld [vmem:[#allocation11 + $0x4c] ss:$16 sps:$4 sm:$0xff]   ;;  %v4263_v5 = vld [vmem:[#allocation11 + $0x168] ss:$16 sps:$4 sm:$0xff]  }
 0x25a   :  { %2296 = vmatpush2.bf16.msra.mxu1 %v4170_v55  ;;  %2337 = vmatpush2.bf16.msra.mxu0 %v4248_v4  ;;  %v4221_v55 = vld [vmem:[#allocation11 + $0x48] ss:$16 sps:$4 sm:$0xff]   ;;  %v4265_v4 = vld [vmem:[#allocation11 + $0x16c] ss:$16 sps:$4 sm:$0xff]  }
 0x25b   :  { %2297 = vmatprep.subr.bf16.mxu1 %v4175_v58  ;;  %2338 = vmatprep.subr.bf16.mxu0 %v4256_v9  ;;  %v4235_v58 = vld [vmem:[#allocation11 + $0xc] ss:$16 sps:$4 sm:$0xff]  }
 0x25c   :  { %v4277_v9 = vld [vmem:[#allocation11 + $0x12c] ss:$16 sps:$4 sm:$0xff]  }
 0x25e   :  { %2298 = vmatpush2.bf16.msra.mxu1 %v4173_v59  ;;  %2339 = vmatpush2.bf16.msra.mxu0 %v4254_v8  ;;  %v4233_v59 = vld [vmem:[#allocation11 + $0x8] ss:$16 sps:$4 sm:$0xff]  }
 0x25f   :  { %2299 = vmatprep.subr.bf16.mxu1 %v4178_v62  ;;  %2340 = vmatprep.subr.bf16.mxu0 %v4262_v13  ;;  %v4247_v62 = vld [vmem:[#allocation11 + $0x1cc] ss:$16 sps:$4 sm:$0xff]   ;;  %v4269_v8 = vld [vmem:[#allocation11 + $0x148] ss:$16 sps:$4 sm:$0xff]  }
 0x262   :  { %2300 = vmatpush2.bf16.msra.mxu1 %v4176_v63  ;;  %2341 = vmatpush2.bf16.msra.mxu0 %v4260_v12  ;;  %v4245_v63 = vld [vmem:[#allocation11 + $0x1c8] ss:$16 sps:$4 sm:$0xff]  }
 0x263   :  { %2301 = vmatprep.subr.bf16.mxu1 %v4181_v2  ;;  %2342 = vmatprep.subr.bf16.mxu0 %v4268_v18  ;;  %v4259_v2 = vld [vmem:[#allocation11 + $0x18c] ss:$16 sps:$4 sm:$0xff]  }
 0x266   :  { %2302 = vmatpush2.bf16.msra.mxu1 %v4179_v3  ;;  %2343 = vmatpush2.bf16.msra.mxu0 %v4266_v17  ;;  %v4257_v3 = vld [vmem:[#allocation11 + $0x188] ss:$16 sps:$4 sm:$0xff]  }
 0x267   :  { %2303 = vmatprep.subr.bf16.mxu1 %v4184_v6  ;;  %2344 = vmatprep.subr.bf16.mxu0 %v4274_v19  ;;  %v4271_v6 = vld [vmem:[#allocation11 + $0x14c] ss:$16 sps:$4 sm:$0xff]  }
 0x268   :  { %v4283_v19 = vld [vmem:[#allocation11 + $0x10c] ss:$16 sps:$4 sm:$0xff]  }
 0x26a   :  { %2304 = vmatpush2.bf16.msra.mxu1 %v4182_v7  ;;  %2345 = vmatpush2.bf16.msra.mxu0 %v4272_v20  ;;  %v664_v7 = vrot.slane %v4844_v24, %v4820_v50 }
 0x26b   :  { %2305 = vmatprep.subr.bf16.mxu1 %v4187_v10  ;;  %2346 = vmatprep.subr.bf16.mxu0 %v4280_v21  ;;  %v668_v10 = vrot.slane %v4844_v24, %v4827_v53 }
 0x26e   :  { %2306 = vmatpush2.bf16.msra.mxu1 %v4185_v11  ;;  %2347 = vmatpush2.bf16.msra.mxu0 %v4278_v22 }
 0x26f   :  { %2357 = vmatprep.subr.bf16.mxu1 %v4193_v16  ;;  %2398 = vmatprep.subr.bf16.mxu0 %v4286_v23  ;;  %v4275_v16 = vld [vmem:[#allocation11 + $0x128] ss:$16 sps:$4 sm:$0xff]  }
 0x2b1   :  { %v1347_v27 = vpop.f32.mrf.mxu1  ;;  %v1388_v28 = vpop.f32.mrf.mxu0 }
 0x2b2   :  { %v1348_v14 = vadd.f32 %v1347_v27, %v656_v25 }
 0x2b3   :  { %v1349_v29 = vpop.f32.mrf.mxu1  ;;  %v1390_v15 = vpop.f32.mrf.mxu0 }
 0x2b4   :  { %v1389_v30 = vadd.f32 %v1388_v28, %v1348_v14  ;;  %v1350_v31 = vadd.f32 %v1349_v29, %v660_v26  ;;  %v4281_v26 = vld [vmem:[#allocation11 + $0x108] ss:$16 sps:$4 sm:$0xff]  }
 0x2b5   :  { %v1351_v32 = vpop.f32.mrf.mxu1  ;;  %v1392_v33 = vpop.f32.mrf.mxu0 }
 0x2b6   :  { %v1391_v34 = vadd.f32 %v1390_v15, %v1350_v31  ;;  %v1477_v35 = vmax.f32 %v1389_v30, 0.0  ;;  %v4284_v15 = vld [vmem:[#allocation11 + $0x2e8] ss:$16 sps:$4 sm:$0xff]   ;;  %v4289_v31 = vld [vmem:[#allocation11 + $0x2cc] ss:$16 sps:$4 sm:$0xff]  }
 0x2b7   :  { %v1352_v36 = vpop.f32.mrf.mxu1  ;;  %v1393_v37 = vpop.f32.mrf.mxu0  ;;  %v4287_v32 = vld [vmem:[#allocation11 + $0x2c8] ss:$16 sps:$4 sm:$0xff]   ;;  %v4292_v33 = vld [vmem:[#allocation11 + $0x2ac] ss:$16 sps:$4 sm:$0xff]  }
 0x2b8   :  { %v1478_v38 = vmax.f32 %v1391_v34, 0.0  ;;  %v4850_v41 = vpack.c.bf16 %v1477_v35, %v1477_v35  ;;  %v4290_v34 = vld [vmem:[#allocation11 + $0x2a8] ss:$16 sps:$4 sm:$0xff]   ;;  %v4295_v35 = vld [vmem:[#allocation11 + $0x28c] ss:$16 sps:$4 sm:$0xff]  }
 0x2b9   :  { %v4332_v36 = vld [vmem:[#allocation13 + $0xe0] ss:$16 sps:$4 sm:$0xff]   ;;  %v4334_v37 = vld [vmem:[#allocation13 + $0xe4] ss:$16 sps:$4 sm:$0xff]  }
 0x2ba   :  { %v1482_v39 = vpack.c.bf16 %v1478_v38, %v1478_v38  ;;  %v4337_v38 = vld [vmem:[#allocation13 + $0xc4] ss:$16 sps:$4 sm:$0xff]  }
 0x2bc   :  { %2307 = vmatprep.mubr.bf16.mxu1 %v1482_v39 }
 0x2bd   :  { %2308 = vmatmul.mubr.bf16.vlgmr.msra.gmra.mxu1 %v4850_v41 }
 0x2be   :  { %2358 = vmatpush1.bf16.msra.mxu1 %v4191_v40  ;;  %2389 = vmatprep.mubr.bf16.mxu1 %v1482_v39  ;;  %v4293_v39 = vld [vmem:[#allocation11 + $0x288] ss:$16 sps:$4 sm:$0xff]   ;;  %v4335_v40 = vld [vmem:[#allocation13 + $0xc0] ss:$16 sps:$4 sm:$0xff]  }
 0x2bf   :  { %2359 = vmatprep.subr.bf16.mxu1 %v4199_v42  ;;  %v4298_v42 = vld [vmem:[#allocation11 + $0x26c] ss:$16 sps:$4 sm:$0xff]  }
 0x2c2   :  { %2360 = vmatpush1.bf16.msra.mxu1 %v4197_v43  ;;  %v4296_v43 = vld [vmem:[#allocation11 + $0x268] ss:$16 sps:$4 sm:$0xff]  }
 0x2c3   :  { %2361 = vmatprep.subr.bf16.mxu1 %v4205_v44  ;;  %v4338_v44 = vld [vmem:[#allocation13 + $0xa0] ss:$16 sps:$4 sm:$0xff]  }
 0x2c6   :  { %2362 = vmatpush1.bf16.msra.mxu1 %v4203_v45  ;;  %v4301_v45 = vld [vmem:[#allocation11 + $0x24c] ss:$16 sps:$4 sm:$0xff]  }
 0x2c7   :  { %2363 = vmatprep.subr.bf16.mxu1 %v4211_v46  ;;  %v4343_v46 = vld [vmem:[#allocation13 + $0x84] ss:$16 sps:$4 sm:$0xff]  }
 0x2ca   :  { %2364 = vmatpush1.bf16.msra.mxu1 %v4209_v47  ;;  %v4299_v47 = vld [vmem:[#allocation11 + $0x248] ss:$16 sps:$4 sm:$0xff]  }
 0x2cb   :  { %2365 = vmatprep.subr.bf16.mxu1 %v4217_v48  ;;  %v4341_v48 = vld [vmem:[#allocation13 + $0x80] ss:$16 sps:$4 sm:$0xff]  }
 0x2ce   :  { %2366 = vmatpush1.bf16.msra.mxu1 %v4215_v51  ;;  %v4304_v51 = vld [vmem:[#allocation11 + $0x22c] ss:$16 sps:$4 sm:$0xff]  }
 0x2cf   :  { %2367 = vmatprep.subr.bf16.mxu1 %v4223_v54  ;;  %v4346_v54 = vld [vmem:[#allocation13 + $0x64] ss:$16 sps:$4 sm:$0xff]  }
 0x2d2   :  { %2368 = vmatpush1.bf16.msra.mxu1 %v4221_v55  ;;  %v4302_v55 = vld [vmem:[#allocation11 + $0x228] ss:$16 sps:$4 sm:$0xff]  }
 0x2d3   :  { %2369 = vmatprep.subr.bf16.mxu1 %v4229_v56  ;;  %v4344_v56 = vld [vmem:[#allocation13 + $0x60] ss:$16 sps:$4 sm:$0xff]  }
 0x2d6   :  { %2370 = vmatpush1.bf16.msra.mxu1 %v4227_v57  ;;  %v4307_v57 = vld [vmem:[#allocation11 + $0x20c] ss:$16 sps:$4 sm:$0xff]  }
 0x2d7   :  { %2371 = vmatprep.subr.bf16.mxu1 %v4235_v58  ;;  %v4349_v58 = vld [vmem:[#allocation13 + $0x44] ss:$16 sps:$4 sm:$0xff]  }
 0x2da   :  { %2372 = vmatpush1.bf16.msra.mxu1 %v4233_v59  ;;  %v4305_v59 = vld [vmem:[#allocation11 + $0x208] ss:$16 sps:$4 sm:$0xff]  }
 0x2db   :  { %2373 = vmatprep.subr.bf16.mxu1 %v4241_v60  ;;  %v4347_v60 = vld [vmem:[#allocation13 + $0x40] ss:$16 sps:$4 sm:$0xff]  }
 0x2de   :  { %2374 = vmatpush2.bf16.msra.mxu1 %v4239_v61  ;;  %v4310_v61 = vld [vmem:[#allocation11 + $0x3ec] ss:$16 sps:$4 sm:$0xff]  }
 0x2df   :  { %2375 = vmatprep.subr.bf16.mxu1 %v4247_v62  ;;  %v4352_v62 = vld [vmem:[#allocation13 + $0x24] ss:$16 sps:$4 sm:$0xff]  }
 0x2e2   :  { %2376 = vmatpush2.bf16.msra.mxu1 %v4245_v63  ;;  %v4308_v63 = vld [vmem:[#allocation11 + $0x3e8] ss:$16 sps:$4 sm:$0xff]  }
 0x2e3   :  { %2377 = vmatprep.subr.bf16.mxu1 %v4253_v0  ;;  %v4350_v0 = vld [vmem:[#allocation13 + $0x20] ss:$16 sps:$4 sm:$0xff]  }
 0x2e6   :  { %2378 = vmatpush2.bf16.msra.mxu1 %v4251_v1  ;;  %v4313_v1 = vld [vmem:[#allocation11 + $0x3cc] ss:$16 sps:$4 sm:$0xff]  }
 0x2e7   :  { %2379 = vmatprep.subr.bf16.mxu1 %v4259_v2  ;;  %v4355_v2 = vld [vmem:[#allocation13 + $0x4] ss:$16 sps:$4 sm:$0xff]  }
 0x2ea   :  { %2380 = vmatpush2.bf16.msra.mxu1 %v4257_v3  ;;  %v4311_v3 = vld [vmem:[#allocation11 + $0x3c8] ss:$16 sps:$4 sm:$0xff]  }
 0x2eb   :  { %2381 = vmatprep.subr.bf16.mxu1 %v4265_v4  ;;  %v4353_v4 = vld [vmem:[#allocation13] ss:$16 sps:$4 sm:$0xff]  }
 0x2ee   :  { %2382 = vmatpush2.bf16.msra.mxu1 %v4263_v5  ;;  %v4316_v5 = vld [vmem:[#allocation11 + $0x3ac] ss:$16 sps:$4 sm:$0xff]  }
 0x2ef   :  { %2383 = vmatprep.subr.bf16.mxu1 %v4271_v6  ;;  %v4358_v6 = vld [vmem:[#allocation13 + $0x1e4] ss:$16 sps:$4 sm:$0xff]  }
 0x2f1   :  { %v1429_v11 = vpop.f32.mrf.mxu1  ;;  %v1470_v12 = vpop.f32.mrf.mxu0 }
 0x2f2   :  { %v1430_v13 = vadd.f32 %v1429_v11, %v664_v7  ;;  %2384 = vmatpush2.bf16.msra.mxu1 %v4269_v8  ;;  %v4314_v7 = vld [vmem:[#allocation11 + $0x3a8] ss:$16 sps:$4 sm:$0xff]   ;;  %v4356_v8 = vld [vmem:[#allocation13 + $0x1e0] ss:$16 sps:$4 sm:$0xff]  }
 0x2f3   :  { %v1431_v17 = vpop.f32.mrf.mxu1  ;;  %v1472_v18 = vpop.f32.mrf.mxu0  ;;  %2385 = vmatprep.subr.bf16.mxu1 %v4277_v9  ;;  %v4319_v9 = vld [vmem:[#allocation11 + $0x38c] ss:$16 sps:$4 sm:$0xff]   ;;  %v4317_v11 = vld [vmem:[#allocation11 + $0x388] ss:$16 sps:$4 sm:$0xff]  }
 0x2f4   :  { %v1471_v20 = vadd.f32 %v1470_v12, %v1430_v13  ;;  %v1432_v21 = vadd.f32 %v1431_v17, %v668_v10  ;;  %v4361_v10 = vld [vmem:[#allocation13 + $0x1c4] ss:$16 sps:$4 sm:$0xff]   ;;  %v4359_v12 = vld [vmem:[#allocation13 + $0x1c0] ss:$16 sps:$4 sm:$0xff]   ;;  %v4322_v13 = vld [vmem:[#allocation11 + $0x36c] ss:$16 sps:$4 sm:$0xff]  }
 0x2f5   :  { %v1433_v22 = vpop.f32.mrf.mxu1  ;;  %v1474_v23 = vpop.f32.mrf.mxu0  ;;  %v4320_v17 = vld [vmem:[#allocation11 + $0x368] ss:$16 sps:$4 sm:$0xff]  }
 0x2f6   :  { %v1473_v25 = vadd.f32 %v1472_v18, %v1432_v21  ;;  %2386 = vmatpush2.bf16.msra.mxu1 %v4275_v16  ;;  %v1479_v27 = vmax.f32 %v1471_v20, 0.0  ;;  %v4364_v16 = vld [vmem:[#allocation13 + $0x1a4] ss:$16 sps:$4 sm:$0xff]   ;;  %v4362_v18 = vld [vmem:[#allocation13 + $0x1a0] ss:$16 sps:$4 sm:$0xff]  }
 0x2f7   :  { %v1434_v28 = vpop.f32.mrf.mxu1  ;;  %v1475_v14 = vpop.f32.mrf.mxu0  ;;  %2387 = vmatprep.subr.bf16.mxu1 %v4283_v19  ;;  %v4325_v19 = vld [vmem:[#allocation11 + $0x34c] ss:$16 sps:$4 sm:$0xff]   ;;  %v4367_v20 = vld [vmem:[#allocation13 + $0x184] ss:$16 sps:$4 sm:$0xff]   ;;  %v4323_v21 = vld [vmem:[#allocation11 + $0x348] ss:$16 sps:$4 sm:$0xff]  }
 0x2f8   :  { %v1480_v24 = vmax.f32 %v1473_v25, 0.0  ;;  %v4857_v30 = vpack.c.bf16 %v1479_v27, %v1479_v27  ;;  %v4365_v22 = vld [vmem:[#allocation13 + $0x180] ss:$16 sps:$4 sm:$0xff]   ;;  %v4328_v23 = vld [vmem:[#allocation11 + $0x32c] ss:$16 sps:$4 sm:$0xff]  }
 0x2f9   :  { %v4370_v25 = vld [vmem:[#allocation13 + $0x164] ss:$16 sps:$4 sm:$0xff]   ;;  %v4368_v27 = vld [vmem:[#allocation13 + $0x160] ss:$16 sps:$4 sm:$0xff]   ;;  %v4331_v28 = vld [vmem:[#allocation11 + $0x30c] ss:$16 sps:$4 sm:$0xff]  }
 0x2fa   :  { %v1484_v29 = vpack.c.bf16 %v1480_v24, %v1480_v24  ;;  %2388 = vmatpush2.bf16.msra.mxu1 %v4281_v26  ;;  %v4326_v26 = vld [vmem:[#allocation11 + $0x328] ss:$16 sps:$4 sm:$0xff]   ;;  %v4373_v14 = vld [vmem:[#allocation13 + $0x144] ss:$16 sps:$4 sm:$0xff]  }
 0x2fb   :  { %3237 = vmatprep.subr.bf16.mxu1 %v4334_v37  ;;  %v4329_v24 = vld [vmem:[#allocation11 + $0x308] ss:$16 sps:$4 sm:$0xff]   ;;  %v4386_v37 = vld [vmem:[#allocation13 + $0x2c0] ss:$16 sps:$4 sm:$0xff]  }
 0x2fc   :  { %2348 = vmatprep.mubr.bf16.mxu0 %v1484_v29 }
 0x2fd   :  { %2349 = vmatmul.mubr.bf16.vlgmr.msra.gmra.mxu0 %v4857_v30  ;;  %2390 = vmatmul.mubr.bf16.vlgmr.msra.gmra.mxu1 %v4850_v41  ;;  %v4340_v41 = vld [vmem:[#allocation13 + $0xa4] ss:$16 sps:$4 sm:$0xff]  }
 0x2fe   :  { %2399 = vmatpush1.bf16.msra.mxu0 %v4284_v15  ;;  %2430 = vmatprep.mubr.bf16.mxu0 %v1484_v29  ;;  %v4371_v29 = vld [vmem:[#allocation13 + $0x140] ss:$16 sps:$4 sm:$0xff]   ;;  %v4376_v15 = vld [vmem:[#allocation13 + $0x124] ss:$16 sps:$4 sm:$0xff]  }
 0x2ff   :  { %2400 = vmatprep.subr.bf16.mxu0 %v4289_v31  ;;  %3238 = vmatpush1.bf16.msra.mxu1 %v4332_v36  ;;  %v4374_v31 = vld [vmem:[#allocation13 + $0x120] ss:$16 sps:$4 sm:$0xff]   ;;  %v4385_v36 = vld [vmem:[#allocation13 + $0xec] ss:$16 sps:$4 sm:$0xff]  }
 0x300   :  { %3239 = vmatprep.subr.bf16.mxu1 %v4337_v38  ;;  %v4388_v38 = vld [vmem:[#allocation13 + $0x2c4] ss:$16 sps:$4 sm:$0xff]  }
 0x302   :  { %2401 = vmatpush1.bf16.msra.mxu0 %v4287_v32  ;;  %v4379_v32 = vld [vmem:[#allocation13 + $0x104] ss:$16 sps:$4 sm:$0xff]  }
 0x303   :  { %2402 = vmatprep.subr.bf16.mxu0 %v4292_v33  ;;  %3240 = vmatpush1.bf16.msra.mxu1 %v4335_v40  ;;  %v4377_v33 = vld [vmem:[#allocation13 + $0x100] ss:$16 sps:$4 sm:$0xff]  }
 0x304   :  { %3241 = vmatprep.subr.bf16.mxu1 %v4340_v41  ;;  %v4398_v40 = vld [vmem:[#allocation13 + $0x280] ss:$16 sps:$4 sm:$0xff]  }
 0x305   :  { %v4404_v41 = vld [vmem:[#allocation13 + $0x260] ss:$16 sps:$4 sm:$0xff]  }
 0x306   :  { %2403 = vmatpush1.bf16.msra.mxu0 %v4290_v34  ;;  %v4380_v34 = vld [vmem:[#allocation13 + $0x2e0] ss:$16 sps:$4 sm:$0xff]  }
 0x307   :  { %2404 = vmatprep.subr.bf16.mxu0 %v4295_v35  ;;  %3242 = vmatpush1.bf16.msra.mxu1 %v4338_v44  ;;  %v4382_v35 = vld [vmem:[#allocation13 + $0x2e4] ss:$16 sps:$4 sm:$0xff]   ;;  %v4410_v44 = vld [vmem:[#allocation13 + $0x240] ss:$16 sps:$4 sm:$0xff]  }
 0x308   :  { %3243 = vmatprep.subr.bf16.mxu1 %v4343_v46  ;;  %v4416_v46 = vld [vmem:[#allocation13 + $0x220] ss:$16 sps:$4 sm:$0xff]  }
 0x30a   :  { %2405 = vmatpush1.bf16.msra.mxu0 %v4293_v39  ;;  %v4392_v39 = vld [vmem:[#allocation13 + $0x2a0] ss:$16 sps:$4 sm:$0xff]  }
 0x30b   :  { %2406 = vmatprep.subr.bf16.mxu0 %v4298_v42  ;;  %3244 = vmatpush1.bf16.msra.mxu1 %v4341_v48  ;;  %v4400_v42 = vld [vmem:[#allocation13 + $0x284] ss:$16 sps:$4 sm:$0xff]   ;;  %v4422_v48 = vld [vmem:[#allocation13 + $0x200] ss:$16 sps:$4 sm:$0xff]  }
 0x30c   :  { %3245 = vmatprep.subr.bf16.mxu1 %v4346_v54  ;;  %v4428_v54 = vld [vmem:[#allocation13 + $0x3e0] ss:$16 sps:$4 sm:$0xff]  }
 0x30e   :  { %2407 = vmatpush1.bf16.msra.mxu0 %v4296_v43  ;;  %v4406_v43 = vld [vmem:[#allocation13 + $0x264] ss:$16 sps:$4 sm:$0xff]  }
 0x30f   :  { %2408 = vmatprep.subr.bf16.mxu0 %v4301_v45  ;;  %3246 = vmatpush1.bf16.msra.mxu1 %v4344_v56  ;;  %v4412_v45 = vld [vmem:[#allocation13 + $0x244] ss:$16 sps:$4 sm:$0xff]   ;;  %v4434_v56 = vld [vmem:[#allocation13 + $0x3c0] ss:$16 sps:$4 sm:$0xff]  }
 0x310   :  { %3247 = vmatprep.subr.bf16.mxu1 %v4349_v58  ;;  %v4440_v58 = vld [vmem:[#allocation13 + $0x3a0] ss:$16 sps:$4 sm:$0xff]  }
 0x312   :  { %2409 = vmatpush1.bf16.msra.mxu0 %v4299_v47  ;;  %v4418_v47 = vld [vmem:[#allocation13 + $0x224] ss:$16 sps:$4 sm:$0xff]  }
 0x313   :  { %2410 = vmatprep.subr.bf16.mxu0 %v4304_v51  ;;  %3248 = vmatpush1.bf16.msra.mxu1 %v4347_v60  ;;  %v4424_v51 = vld [vmem:[#allocation13 + $0x204] ss:$16 sps:$4 sm:$0xff]   ;;  %v4446_v60 = vld [vmem:[#allocation13 + $0x380] ss:$16 sps:$4 sm:$0xff]  }
 0x314   :  { %3249 = vmatprep.subr.bf16.mxu1 %v4352_v62  ;;  %v4452_v62 = vld [vmem:[#allocation13 + $0x360] ss:$16 sps:$4 sm:$0xff]  }
 0x316   :  { %2411 = vmatpush1.bf16.msra.mxu0 %v4302_v55  ;;  %v4430_v55 = vld [vmem:[#allocation13 + $0x3e4] ss:$16 sps:$4 sm:$0xff]  }
 0x317   :  { %2412 = vmatprep.subr.bf16.mxu0 %v4307_v57  ;;  %3250 = vmatpush1.bf16.msra.mxu1 %v4350_v0  ;;  %v4436_v57 = vld [vmem:[#allocation13 + $0x3c4] ss:$16 sps:$4 sm:$0xff]   ;;  %v4458_v0 = vld [vmem:[#allocation13 + $0x340] ss:$16 sps:$4 sm:$0xff]  }
 0x318   :  { %3251 = vmatprep.subr.bf16.mxu1 %v4355_v2  ;;  %v4466_v2 = vld [vmem:[#allocation13 + $0x324] ss:$16 sps:$4 sm:$0xff]  }
 0x31a   :  { %2413 = vmatpush1.bf16.msra.mxu0 %v4305_v59  ;;  %v4442_v59 = vld [vmem:[#allocation13 + $0x3a4] ss:$16 sps:$4 sm:$0xff]  }
 0x31b   :  { %2414 = vmatprep.subr.bf16.mxu0 %v4310_v61  ;;  %3252 = vmatpush1.bf16.msra.mxu1 %v4353_v4  ;;  %v4448_v61 = vld [vmem:[#allocation13 + $0x384] ss:$16 sps:$4 sm:$0xff]   ;;  %v4464_v4 = vld [vmem:[#allocation13 + $0x320] ss:$16 sps:$4 sm:$0xff]  }
 0x31c   :  { %3253 = vmatprep.subr.bf16.mxu1 %v4358_v6  ;;  %v4472_v6 = vld [vmem:[#allocation13 + $0x304] ss:$16 sps:$4 sm:$0xff]  }
 0x31e   :  { %2415 = vmatpush2.bf16.msra.mxu0 %v4308_v63  ;;  %v4454_v63 = vld [vmem:[#allocation13 + $0x364] ss:$16 sps:$4 sm:$0xff]  }
 0x31f   :  { %2416 = vmatprep.subr.bf16.mxu0 %v4313_v1  ;;  %3254 = vmatpush2.bf16.msra.mxu1 %v4356_v8  ;;  %v4460_v1 = vld [vmem:[#allocation13 + $0x344] ss:$16 sps:$4 sm:$0xff]   ;;  %v4470_v8 = vld [vmem:[#allocation13 + $0x300] ss:$16 sps:$4 sm:$0xff]  }
 0x320   :  { %3255 = vmatprep.subr.bf16.mxu1 %v4361_v10  ;;  %v4478_v10 = vld [vmem:[#allocation13 + $0x2ec] ss:$16 sps:$4 sm:$0xff]  }
 0x322   :  { %2417 = vmatpush2.bf16.msra.mxu0 %v4311_v3 }
 0x323   :  { %2418 = vmatprep.subr.bf16.mxu0 %v4316_v5  ;;  %3256 = vmatpush2.bf16.msra.mxu1 %v4359_v12 }
 0x324   :  { %3257 = vmatprep.subr.bf16.mxu1 %v4364_v16 }
 0x326   :  { %2419 = vmatpush2.bf16.msra.mxu0 %v4314_v7 }
 0x327   :  { %2420 = vmatprep.subr.bf16.mxu0 %v4319_v9  ;;  %3258 = vmatpush2.bf16.msra.mxu1 %v4362_v18 }
 0x328   :  { %3259 = vmatprep.subr.bf16.mxu1 %v4367_v20 }
 0x32a   :  { %2421 = vmatpush2.bf16.msra.mxu0 %v4317_v11  ;;  %v4865_v11 = vld [vmem:[%s4907_s8] sm:$0xf] }
 0x32b   :  { %2422 = vmatprep.subr.bf16.mxu0 %v4322_v13  ;;  %3260 = vmatpush2.bf16.msra.mxu1 %v4365_v22  ;;  %v1618_v12 = vrot.slane %v4865_v11, %v4818_v49  ;;  %v1622_v13 = vrot.slane %v4865_v11, %v4825_v52 }
 0x32c   :  { %3261 = vmatprep.subr.bf16.mxu1 %v4370_v25 }
 0x32e   :  { %2423 = vmatpush2.bf16.msra.mxu0 %v4320_v17 }
 0x32f   :  { %2424 = vmatprep.subr.bf16.mxu0 %v4325_v19  ;;  %3262 = vmatpush2.bf16.msra.mxu1 %v4368_v27 }
 0x330   :  { %3263 = vmatprep.subr.bf16.mxu1 %v4373_v14 }
 0x332   :  { %2425 = vmatpush2.bf16.msra.mxu0 %v4323_v21 }
 0x333   :  { %2426 = vmatprep.subr.bf16.mxu0 %v4328_v23  ;;  %3264 = vmatpush2.bf16.msra.mxu1 %v4371_v29 }
 0x334   :  { %3265 = vmatprep.subr.bf16.mxu1 %v4376_v15  ;;  %v4383_v15 = vld [vmem:[#allocation13 + $0xe8] ss:$16 sps:$4 sm:$0xff]  }
 0x336   :  { %2427 = vmatpush2.bf16.msra.mxu0 %v4326_v26 }
 0x337   :  { %2428 = vmatprep.subr.bf16.mxu0 %v4331_v28  ;;  %3266 = vmatpush2.bf16.msra.mxu1 %v4374_v31 }
 0x338   :  { %3267 = vmatprep.subr.bf16.mxu1 %v4379_v32  ;;  %v4391_v32 = vld [vmem:[#allocation13 + $0xcc] ss:$16 sps:$4 sm:$0xff]  }
 0x33a   :  { %2429 = vmatpush2.bf16.msra.mxu0 %v4329_v24 }
 0x33b   :  { %3268 = vmatpush2.bf16.msra.mxu1 %v4377_v33  ;;  %3278 = vmatprep.subr.bf16.mxu0 %v4382_v35  ;;  %v4389_v33 = vld [vmem:[#allocation13 + $0xc8] ss:$16 sps:$4 sm:$0xff]  }
 0x33c   :  { %3319 = vmatprep.subr.bf16.mxu1 %v4385_v36  ;;  %v4395_v35 = vld [vmem:[#allocation13 + $0xa8] ss:$16 sps:$4 sm:$0xff]   ;;  %v4403_v36 = vld [vmem:[#allocation13 + $0x8c] ss:$16 sps:$4 sm:$0xff]  }
 0x33d   :  { %2431 = vmatmul.mubr.bf16.vlgmr.msra.gmra.mxu0 %v4857_v30  ;;  %v4394_v30 = vld [vmem:[#allocation13 + $0x2a4] ss:$16 sps:$4 sm:$0xff]  }
 0x33e   :  { %3279 = vmatpush1.bf16.msra.mxu0 %v4380_v34  ;;  %v4397_v34 = vld [vmem:[#allocation13 + $0xac] ss:$16 sps:$4 sm:$0xff]  }
 0x33f   :  { %3280 = vmatprep.subr.bf16.mxu0 %v4388_v38  ;;  %v4409_v38 = vld [vmem:[#allocation13 + $0x6c] ss:$16 sps:$4 sm:$0xff]  }
 0x342   :  { %3281 = vmatpush1.bf16.msra.mxu0 %v4386_v37  ;;  %v4401_v37 = vld [vmem:[#allocation13 + $0x88] ss:$16 sps:$4 sm:$0xff]  }
 0x343   :  { %3282 = vmatprep.subr.bf16.mxu0 %v4394_v30  ;;  %v4415_v30 = vld [vmem:[#allocation13 + $0x4c] ss:$16 sps:$4 sm:$0xff]  }
 0x346   :  { %3283 = vmatpush1.bf16.msra.mxu0 %v4392_v39  ;;  %v4407_v39 = vld [vmem:[#allocation13 + $0x68] ss:$16 sps:$4 sm:$0xff]  }
 0x347   :  { %3284 = vmatprep.subr.bf16.mxu0 %v4400_v42  ;;  %v4421_v42 = vld [vmem:[#allocation13 + $0x2c] ss:$16 sps:$4 sm:$0xff]  }
 0x34a   :  { %3285 = vmatpush1.bf16.msra.mxu0 %v4398_v40  ;;  %v4413_v40 = vld [vmem:[#allocation13 + $0x48] ss:$16 sps:$4 sm:$0xff]  }
 0x34b   :  { %3286 = vmatprep.subr.bf16.mxu0 %v4406_v43  ;;  %v4427_v43 = vld [vmem:[#allocation13 + $0xc] ss:$16 sps:$4 sm:$0xff]  }
 0x34e   :  { %3287 = vmatpush1.bf16.msra.mxu0 %v4404_v41  ;;  %v4419_v41 = vld [vmem:[#allocation13 + $0x28] ss:$16 sps:$4 sm:$0xff]  }
 0x34f   :  { %3288 = vmatprep.subr.bf16.mxu0 %v4412_v45  ;;  %v4433_v45 = vld [vmem:[#allocation13 + $0x1ec] ss:$16 sps:$4 sm:$0xff]  }
 0x352   :  { %3289 = vmatpush1.bf16.msra.mxu0 %v4410_v44  ;;  %v4425_v44 = vld [vmem:[#allocation13 + $0x8] ss:$16 sps:$4 sm:$0xff]  }
 0x353   :  { %3290 = vmatprep.subr.bf16.mxu0 %v4418_v47  ;;  %v4439_v47 = vld [vmem:[#allocation13 + $0x1cc] ss:$16 sps:$4 sm:$0xff]  }
 0x356   :  { %3291 = vmatpush1.bf16.msra.mxu0 %v4416_v46  ;;  %v4431_v46 = vld [vmem:[#allocation13 + $0x1e8] ss:$16 sps:$4 sm:$0xff]  }
 0x357   :  { %3292 = vmatprep.subr.bf16.mxu0 %v4424_v51  ;;  %v4445_v51 = vld [vmem:[#allocation13 + $0x1ac] ss:$16 sps:$4 sm:$0xff]  }
 0x35a   :  { %3293 = vmatpush1.bf16.msra.mxu0 %v4422_v48  ;;  %v4437_v48 = vld [vmem:[#allocation13 + $0x1c8] ss:$16 sps:$4 sm:$0xff]  }
 0x35b   :  { %3294 = vmatprep.subr.bf16.mxu0 %v4430_v55  ;;  %v4451_v55 = vld [vmem:[#allocation13 + $0x18c] ss:$16 sps:$4 sm:$0xff]  }
 0x35e   :  { %3295 = vmatpush2.bf16.msra.mxu0 %v4428_v54  ;;  %v4443_v54 = vld [vmem:[#allocation13 + $0x1a8] ss:$16 sps:$4 sm:$0xff]  }
 0x35f   :  { %3296 = vmatprep.subr.bf16.mxu0 %v4436_v57  ;;  %v4457_v57 = vld [vmem:[#allocation13 + $0x16c] ss:$16 sps:$4 sm:$0xff]  }
 0x362   :  { %3297 = vmatpush2.bf16.msra.mxu0 %v4434_v56  ;;  %v4449_v56 = vld [vmem:[#allocation13 + $0x188] ss:$16 sps:$4 sm:$0xff]  }
 0x363   :  { %3298 = vmatprep.subr.bf16.mxu0 %v4442_v59  ;;  %v4463_v59 = vld [vmem:[#allocation13 + $0x14c] ss:$16 sps:$4 sm:$0xff]  }
 0x366   :  { %3299 = vmatpush2.bf16.msra.mxu0 %v4440_v58  ;;  %v4455_v58 = vld [vmem:[#allocation13 + $0x168] ss:$16 sps:$4 sm:$0xff]  }
 0x367   :  { %3300 = vmatprep.subr.bf16.mxu0 %v4448_v61  ;;  %v4461_v61 = vld [vmem:[#allocation13 + $0x148] ss:$16 sps:$4 sm:$0xff]  }
 0x36a   :  { %3301 = vmatpush2.bf16.msra.mxu0 %v4446_v60  ;;  %v1626_v60 = vrot.slane %v4865_v11, %v4820_v50 }
 0x36b   :  { %3302 = vmatprep.subr.bf16.mxu0 %v4454_v63  ;;  %v1630_v63 = vrot.slane %v4865_v11, %v4827_v53 }
 0x36e   :  { %3303 = vmatpush2.bf16.msra.mxu0 %v4452_v62  ;;  %v4469_v62 = vld [vmem:[#allocation13 + $0x12c] ss:$16 sps:$4 sm:$0xff]  }
 0x36f   :  { %3304 = vmatprep.subr.bf16.mxu0 %v4460_v1  ;;  %v4467_v1 = vld [vmem:[#allocation13 + $0x128] ss:$16 sps:$4 sm:$0xff]  }
 0x372   :  { %3305 = vmatpush2.bf16.msra.mxu0 %v4458_v0 }
 0x373   :  { %3306 = vmatprep.subr.bf16.mxu0 %v4466_v2 }
 0x376   :  { %3307 = vmatpush2.bf16.msra.mxu0 %v4464_v4 }
 0x377   :  { %3308 = vmatprep.subr.bf16.mxu0 %v4472_v6 }
 0x37a   :  { %3309 = vmatpush2.bf16.msra.mxu0 %v4470_v8  ;;  %v4473_v8 = vld [vmem:[#allocation13 + $0x108] ss:$16 sps:$4 sm:$0xff]  }
 0x37b   :  { %3360 = vmatprep.subr.bf16.mxu0 %v4478_v10 }
 0x37d   :  { %v2309_v3 = vpop.f32.mrf.mxu1 }
 0x37e   :  { %v2310_v16 = vadd.f32 %v2309_v3, %v1618_v12  ;;  %v4475_v3 = vld [vmem:[#allocation13 + $0x10c] ss:$16 sps:$4 sm:$0xff]  }
 0x37f   :  { %v2311_v5 = vpop.f32.mrf.mxu1 }
 0x380   :  { %v2312_v19 = vadd.f32 %v2311_v5, %v1622_v13 }
 0x381   :  { %v2313_v7 = vpop.f32.mrf.mxu1 }
 0x383   :  { %v2314_v9 = vpop.f32.mrf.mxu1 }
 0x3bd   :  { %v2350_v17 = vpop.f32.mrf.mxu0  ;;  %v4871_v18 = vpop.f32.mrf.mxu1 }
 0x3be   :  { %v2351_v20 = vadd.f32 %v2350_v17, %v2310_v16  ;;  %v2392_v0 = vadd.f32 %v4871_v18, %v1626_v60  ;;  %v4476_v16 = vld [vmem:[#allocation13 + $0x2e8] ss:$16 sps:$4 sm:$0xff]   ;;  %v4481_v18 = vld [vmem:[#allocation13 + $0x2cc] ss:$16 sps:$4 sm:$0xff]  }
 0x3bf   :  { %v2352_v21 = vpop.f32.mrf.mxu0  ;;  %v4873_v22 = vpop.f32.mrf.mxu1 }
 0x3c0   :  { %v2353_v23 = vadd.f32 %v2352_v21, %v2312_v19  ;;  %v2439_v25 = vmax.f32 %v2351_v20, 0.0  ;;  %v2394_v4 = vadd.f32 %v4873_v22, %v1630_v63  ;;  %v4479_v19 = vld [vmem:[#allocation13 + $0x2c8] ss:$16 sps:$4 sm:$0xff]   ;;  %v4484_v20 = vld [vmem:[#allocation13 + $0x2ac] ss:$16 sps:$4 sm:$0xff]  }
 0x3c1   :  { %v2354_v26 = vpop.f32.mrf.mxu0  ;;  %v2395_v27 = vpop.f32.mrf.mxu1  ;;  %v4482_v21 = vld [vmem:[#allocation13 + $0x2a8] ss:$16 sps:$4 sm:$0xff]   ;;  %v4487_v22 = vld [vmem:[#allocation13 + $0x28c] ss:$16 sps:$4 sm:$0xff]  }
 0x3c2   :  { %v2440_v28 = vmax.f32 %v2353_v23, 0.0  ;;  %v4875_v31 = vpack.c.bf16 %v2439_v25, %v2439_v25  ;;  %v4485_v23 = vld [vmem:[#allocation13 + $0x288] ss:$16 sps:$4 sm:$0xff]   ;;  %v4490_v25 = vld [vmem:[#allocation13 + $0x26c] ss:$16 sps:$4 sm:$0xff]  }
 0x3c3   :  { %v2355_v14 = vpop.f32.mrf.mxu0  ;;  %v2396_v24 = vpop.f32.mrf.mxu1  ;;  %v4488_v26 = vld [vmem:[#allocation13 + $0x268] ss:$16 sps:$4 sm:$0xff]   ;;  %v4493_v27 = vld [vmem:[#allocation13 + $0x24c] ss:$16 sps:$4 sm:$0xff]  }
 0x3c4   :  { %v2444_v29 = vpack.c.bf16 %v2440_v28, %v2440_v28  ;;  %v4491_v28 = vld [vmem:[#allocation13 + $0x248] ss:$16 sps:$4 sm:$0xff]   ;;  %v4496_v14 = vld [vmem:[#allocation13 + $0x22c] ss:$16 sps:$4 sm:$0xff]  }
 0x3c5   :  { %v4494_v24 = vld [vmem:[#allocation13 + $0x228] ss:$16 sps:$4 sm:$0xff]  }
 0x3c6   :  { %3269 = vmatprep.mubr.bf16.mxu1 %v2444_v29 }
 0x3c7   :  { %3270 = vmatmul.mubr.bf16.vlgmr.msra.gmra.mxu1 %v4875_v31 }
 0x3c8   :  { %3320 = vmatpush1.bf16.msra.mxu1 %v4383_v15  ;;  %3351 = vmatprep.mubr.bf16.mxu1 %v2444_v29  ;;  %v4499_v29 = vld [vmem:[#allocation13 + $0x20c] ss:$16 sps:$4 sm:$0xff]   ;;  %v4497_v15 = vld [vmem:[#allocation13 + $0x208] ss:$16 sps:$4 sm:$0xff]  }
 0x3c9   :  { %3321 = vmatprep.subr.bf16.mxu1 %v4391_v32  ;;  %v4500_v32 = vld [vmem:[#allocation13 + $0x3e8] ss:$16 sps:$4 sm:$0xff]  }
 0x3cc   :  { %3322 = vmatpush1.bf16.msra.mxu1 %v4389_v33  ;;  %v4505_v33 = vld [vmem:[#allocation13 + $0x3cc] ss:$16 sps:$4 sm:$0xff]  }
 0x3cd   :  { %3323 = vmatprep.subr.bf16.mxu1 %v4397_v34  ;;  %v4503_v34 = vld [vmem:[#allocation13 + $0x3c8] ss:$16 sps:$4 sm:$0xff]  }
 0x3d0   :  { %3324 = vmatpush1.bf16.msra.mxu1 %v4395_v35  ;;  %v4508_v35 = vld [vmem:[#allocation13 + $0x3ac] ss:$16 sps:$4 sm:$0xff]  }
 0x3d1   :  { %3325 = vmatprep.subr.bf16.mxu1 %v4403_v36  ;;  %v4506_v36 = vld [vmem:[#allocation13 + $0x3a8] ss:$16 sps:$4 sm:$0xff]  }
 0x3d4   :  { %3326 = vmatpush1.bf16.msra.mxu1 %v4401_v37  ;;  %v4511_v37 = vld [vmem:[#allocation13 + $0x38c] ss:$16 sps:$4 sm:$0xff]  }
 0x3d5   :  { %3327 = vmatprep.subr.bf16.mxu1 %v4409_v38  ;;  %v4509_v38 = vld [vmem:[#allocation13 + $0x388] ss:$16 sps:$4 sm:$0xff]  }
 0x3d8   :  { %3328 = vmatpush1.bf16.msra.mxu1 %v4407_v39  ;;  %v4514_v39 = vld [vmem:[#allocation13 + $0x36c] ss:$16 sps:$4 sm:$0xff]  }
 0x3d9   :  { %3329 = vmatprep.subr.bf16.mxu1 %v4415_v30  ;;  %v4512_v30 = vld [vmem:[#allocation13 + $0x368] ss:$16 sps:$4 sm:$0xff]  }
 0x3dc   :  { %3330 = vmatpush1.bf16.msra.mxu1 %v4413_v40  ;;  %v4517_v40 = vld [vmem:[#allocation13 + $0x34c] ss:$16 sps:$4 sm:$0xff]  }
 0x3dd   :  { %3331 = vmatprep.subr.bf16.mxu1 %v4421_v42  ;;  %v4515_v42 = vld [vmem:[#allocation13 + $0x348] ss:$16 sps:$4 sm:$0xff]  }
 0x3e0   :  { %3332 = vmatpush1.bf16.msra.mxu1 %v4419_v41  ;;  %v4520_v41 = vld [vmem:[#allocation13 + $0x32c] ss:$16 sps:$4 sm:$0xff]  }
 0x3e1   :  { %3333 = vmatprep.subr.bf16.mxu1 %v4427_v43  ;;  %v4518_v43 = vld [vmem:[#allocation13 + $0x328] ss:$16 sps:$4 sm:$0xff]  }
 0x3e4   :  { %3334 = vmatpush1.bf16.msra.mxu1 %v4425_v44  ;;  %v4523_v44 = vld [vmem:[#allocation13 + $0x30c] ss:$16 sps:$4 sm:$0xff]  }
 0x3e5   :  { %3335 = vmatprep.subr.bf16.mxu1 %v4433_v45  ;;  %v4521_v45 = vld [vmem:[#allocation13 + $0x308] ss:$16 sps:$4 sm:$0xff]  }
 0x3e8   :  { %3336 = vmatpush2.bf16.msra.mxu1 %v4431_v46 }
 0x3e9   :  { %3337 = vmatprep.subr.bf16.mxu1 %v4439_v47 }
 0x3ec   :  { %3338 = vmatpush2.bf16.msra.mxu1 %v4437_v48 }
 0x3ed   :  { %3339 = vmatprep.subr.bf16.mxu1 %v4445_v51 }
 0x3f0   :  { %3340 = vmatpush2.bf16.msra.mxu1 %v4443_v54  ;;  %v2575_v54 = vld [vmem:[%s4909_s10] sm:$0xf]  ;;  %s4724_s10 = smov [#allocation14]  }
 0x3f1   :  { %3341 = vmatprep.subr.bf16.mxu1 %v4451_v55  ;;  %v2580_v55 = vrot.slane %v2575_v54, %v4818_v49  ;;  %s3435_s16 = sshll.u32 %s4724_s10, 4  ;;  %s3436_s16 = int_to_ptr.vmem [resolvable:$true] %s3435_s16 }
 0x3f2   :  { %s4680_s17 = scalar_lea.vmem %s3436_s16, 512  ;;  %p4685_p8 = scmp.lt.s32.totalorder %s3436_s16, %s3436_s16 }
 0x3f3   :  { %p4681_p7 = scmp.ne.s32.totalorder %s3436_s16, %s4680_s17  ;;  %p4686_p9 = scmp.lt.s32.totalorder %s4680_s17, %s4680_s17 }
 0x3f4   :  { %3342 = vmatpush2.bf16.msra.mxu1 %v4449_v56  ;;  %v2584_v56 = vrot.slane %v2575_v54, %v4825_v52 }
 0x3f5   :  { %3343 = vmatprep.subr.bf16.mxu1 %v4457_v57  ;;  %p4687_p10 = por %p4686_p9, %p4685_p8 }
 0x3f7   :  { %p4688_p11 = pnand %p4687_p10, %p4681_p7 }
 0x3f8   :  { %3344 = vmatpush2.bf16.msra.mxu1 %v4455_v58 }
 0x3f9   :  { %3345 = vmatprep.subr.bf16.mxu1 %v4463_v59 }
 0x3fc   :  { %3346 = vmatpush2.bf16.msra.mxu1 %v4461_v61 }
 0x3fd   :  { %v2432_v2 = vpop.f32.mrf.mxu0  ;;  %3347 = vmatprep.subr.bf16.mxu1 %v4469_v62 }
 0x3fe   :  { %v2433_v5 = vadd.f32 %v2432_v2, %v2392_v0 }
 0x3ff   :  { %v2434_v6 = vpop.f32.mrf.mxu0 }
 0x400   :  { %v2435_v7 = vadd.f32 %v2434_v6, %v2394_v4  ;;  %3348 = vmatpush2.bf16.msra.mxu1 %v4467_v1  ;;  %v2441_v9 = vmax.f32 %v2433_v5, 0.0 }
 0x401   :  { %v2436_v10 = vpop.f32.mrf.mxu0  ;;  %3349 = vmatprep.subr.bf16.mxu1 %v4475_v3 }
 0x402   :  { %v2442_v12 = vmax.f32 %v2435_v7, 0.0  ;;  %v4884_v17 = vpack.c.bf16 %v2441_v9, %v2441_v9 }
 0x403   :  { %v2437_v13 = vpop.f32.mrf.mxu0 }
 0x404   :  { %v2446_v11 = vpack.c.bf16 %v2442_v12, %v2442_v12  ;;  %3350 = vmatpush2.bf16.msra.mxu1 %v4473_v8  ;;  %v2588_v12 = vrot.slane %v2575_v54, %v4820_v50  ;;  %v2592_v13 = vrot.slane %v2575_v54, %v4827_v53 }
 0x406   :  { %3310 = vmatprep.mubr.bf16.mxu0 %v2446_v11 }
 0x407   :  { %3311 = vmatmul.mubr.bf16.vlgmr.msra.gmra.mxu0 %v4884_v17  ;;  %3352 = vmatmul.mubr.bf16.vlgmr.msra.gmra.mxu1 %v4875_v31  ;;  %v4502_v31 = vld [vmem:[#allocation13 + $0x3ec] ss:$16 sps:$4 sm:$0xff]  }
 0x408   :  { %3361 = vmatpush1.bf16.msra.mxu0 %v4476_v16  ;;  %3392 = vmatprep.mubr.bf16.mxu0 %v2446_v11 }
 0x409   :  { %3362 = vmatprep.subr.bf16.mxu0 %v4481_v18 }
 0x40c   :  { %3363 = vmatpush1.bf16.msra.mxu0 %v4479_v19 }
 0x40d   :  { %3364 = vmatprep.subr.bf16.mxu0 %v4484_v20 }
 0x410   :  { %3365 = vmatpush1.bf16.msra.mxu0 %v4482_v21 }
 0x411   :  { %3366 = vmatprep.subr.bf16.mxu0 %v4487_v22 }
 0x414   :  { %3367 = vmatpush1.bf16.msra.mxu0 %v4485_v23 }
 0x415   :  { %3368 = vmatprep.subr.bf16.mxu0 %v4490_v25 }
 0x418   :  { %3369 = vmatpush1.bf16.msra.mxu0 %v4488_v26 }
 0x419   :  { %3370 = vmatprep.subr.bf16.mxu0 %v4493_v27 }
 0x41c   :  { %3371 = vmatpush1.bf16.msra.mxu0 %v4491_v28 }
 0x41d   :  { %3372 = vmatprep.subr.bf16.mxu0 %v4496_v14 }
 0x420   :  { %3373 = vmatpush1.bf16.msra.mxu0 %v4494_v24 }
 0x421   :  { %3374 = vmatprep.subr.bf16.mxu0 %v4499_v29 }
 0x424   :  { %3375 = vmatpush1.bf16.msra.mxu0 %v4497_v15 }
 0x425   :  { %3376 = vmatprep.subr.bf16.mxu0 %v4502_v31 }
 0x428   :  { %3377 = vmatpush2.bf16.msra.mxu0 %v4500_v32 }
 0x429   :  { %3378 = vmatprep.subr.bf16.mxu0 %v4505_v33 }
 0x42c   :  { %3379 = vmatpush2.bf16.msra.mxu0 %v4503_v34 }
 0x42d   :  { %3380 = vmatprep.subr.bf16.mxu0 %v4508_v35 }
 0x430   :  { %3381 = vmatpush2.bf16.msra.mxu0 %v4506_v36 }
 0x431   :  { %3382 = vmatprep.subr.bf16.mxu0 %v4511_v37 }
 0x434   :  { %3383 = vmatpush2.bf16.msra.mxu0 %v4509_v38 }
 0x435   :  { %3384 = vmatprep.subr.bf16.mxu0 %v4514_v39 }
 0x438   :  { %3385 = vmatpush2.bf16.msra.mxu0 %v4512_v30 }
 0x439   :  { %3386 = vmatprep.subr.bf16.mxu0 %v4517_v40 }
 0x43c   :  { %3387 = vmatpush2.bf16.msra.mxu0 %v4515_v42 }
 0x43d   :  { %3388 = vmatprep.subr.bf16.mxu0 %v4520_v41 }
 0x440   :  { %3389 = vmatpush2.bf16.msra.mxu0 %v4518_v43 }
 0x441   :  { %3390 = vmatprep.subr.bf16.mxu0 %v4523_v44 }
 0x444   :  { %3391 = vmatpush2.bf16.msra.mxu0 %v4521_v45 }
 0x447   :  { %3393 = vmatmul.mubr.bf16.vlgmr.msra.gmra.mxu0 %v4884_v17 }
 0x487   :  { %v3271_v46 = vpop.f32.mrf.mxu1 }
 0x488   :  { %v3272_v57 = vadd.f32 %v3271_v46, %v2580_v55 }
 0x489   :  { %v3273_v47 = vpop.f32.mrf.mxu1 }
 0x48a   :  { %v3274_v60 = vadd.f32 %v3273_v47, %v2584_v56 }
 0x48b   :  { %v3275_v48 = vpop.f32.mrf.mxu1 }
 0x48d   :  { %v3276_v51 = vpop.f32.mrf.mxu1 }
 0x4c7   :  { %v3312_v58 = vpop.f32.mrf.mxu0  ;;  %v3353_v59 = vpop.f32.mrf.mxu1 }
 0x4c8   :  { %v3313_v61 = vadd.f32 %v3312_v58, %v3272_v57  ;;  %v3354_v11 = vadd.f32 %v3353_v59, %v2588_v12 }
 0x4c9   :  { %v3314_v62 = vpop.f32.mrf.mxu0  ;;  %v3355_v63 = vpop.f32.mrf.mxu1 }
 0x4ca   :  { %v3865_v0 = vmul.f32 -1.442695, %v3313_v61  ;;  %v3315_v1 = vadd.f32 %v3314_v62, %v3274_v60  ;;  %v3356_v17 = vadd.f32 %v3355_v63, %v2592_v13 }
 0x4cb   :  { %v3316_v2 = vpop.f32.mrf.mxu0  ;;  %v3357_v3 = vpop.f32.mrf.mxu1 }
 0x4cc   :  { %4524 = vpow2.f32 %v3865_v0  ;;  %v3866_v4 = vmul.f32 -1.442695, %v3315_v1 }
 0x4cd   :  { %v3317_v5 = vpop.f32.mrf.mxu0  ;;  %v3358_v6 = vpop.f32.mrf.mxu1 }
 0x4ce   :  { %4526 = vpow2.f32 %v3866_v4 }
 0x4d9   :  { %v4525_v7 = vpop.eup %4524 }
 0x4da   :  { %v3413_v49 = vadd.f32 1.0, %v4525_v7 }
 0x4db   :  { %v4527_v8 = vpop.eup %4526 }
 0x4dc   :  { %4528 = vrcp.f32 %v3413_v49  ;;  %v3414_v52 = vadd.f32 1.0, %v4527_v8 }
 0x4de   :  { %4530 = vrcp.f32 %v3414_v52 }
 0x4e9   :  { %v4529_v9 = vpop.eup %4528 }
 0x4ea   :  { %3425 = vst [vmem:[#allocation14] sm:$0xff] %v4529_v9 }
 0x4eb   :  { %v4531_v10 = vpop.eup %4530 }
 0x4ec   :  { %3426 = vst [vmem:[#allocation14 + $0x8] sm:$0xff] %v4531_v10 }
 0x507   :  { %v3394_v16 = vpop.f32.mrf.mxu0 }
 0x508   :  { %v3395_v18 = vadd.f32 %v3394_v16, %v3354_v11 }
 0x509   :  { %v3396_v19 = vpop.f32.mrf.mxu0 }
 0x50a   :  { %v3867_v20 = vmul.f32 -1.442695, %v3395_v18  ;;  %v3397_v21 = vadd.f32 %v3396_v19, %v3356_v17 }
 0x50b   :  { %v3398_v22 = vpop.f32.mrf.mxu0 }
 0x50c   :  { %4532 = vpow2.f32 %v3867_v20  ;;  %v3868_v23 = vmul.f32 -1.442695, %v3397_v21 }
 0x50d   :  { %v3399_v25 = vpop.f32.mrf.mxu0 }
 0x50e   :  { %4534 = vpow2.f32 %v3868_v23 }
 0x519   :  { %v4533_v26 = vpop.eup %4532 }
 0x51a   :  { %v3415_v27 = vadd.f32 1.0, %v4533_v26 }
 0x51b   :  { %v4535_v28 = vpop.eup %4534 }
 0x51c   :  { %4536 = vrcp.f32 %v3415_v27  ;;  %v3416_v14 = vadd.f32 1.0, %v4535_v28 }
 0x51e   :  { %4538 = vrcp.f32 %v3416_v14 }
 0x529   :  { %v4537_v50 = vpop.eup %4536 }
 0x52a   :  { %3427 = vst [vmem:[#allocation14 + $0x10] sm:$0xff] %v4537_v50 }
 0x52b   :  { %v4539_v53 = vpop.eup %4538 }
 0x52c   :  { %3428 = vst [vmem:[#allocation14 + $0x18] sm:$0xff] %v4539_v53 }
 0x52d   :  { %4691 = shalt.err (!%p4688_p11)
}
 0x52e   :  { %3438 = dma.vmem_to_hbm [thread:$0]  %s3436_s16, 512, %s4910_s11, [#allocation4]  }
 0x52f   :  { %4708 = dma.done.wait [#allocation4], 512  }
 0x530   :  { %4709 = vsyncadd [#allocation4], 4294966784 }
 0x531   :  { %3442 = vsyncpa [#allocation3], 1 }
 0x532   :  { %3443 = vsyncpa [#allocation6], 1 }
 0x533   :  { %3444 = vsyncpa [#allocation9], 1 }
 0x534   :  { %3445 = vsyncpa [#allocation12], 1 }
 0x535   :  { %3446 = vsyncpa [#allocation4], 1 }

</bundles_post_ra>
